<compile_context>
chip_gen: v6e
topology: v6e:2x2x1
jax: 0.10.0
libtpu: 0.0.40
codegen_flags: <defaults>
</compile_context>

<pallas_src>
import functools

import jax
import jax.numpy as jnp
from jax.experimental import pallas as pl
from jax.experimental.pallas import tpu as pltpu


# Plain Python float: a module-level jnp constant would be captured by the
# kernel trace ("captures constants" error).
_NEG = -1.0e30


def _masked_clip_loss_kernel(
    scale_ref,       # SMEM (1,) f32                      logit_scale
    img_ref,         # VMEM (1, half_pad|tile, d_pad)     image rows, half h
    txt_ref,         # VMEM (1, tile, d_pad)              text rows,  half h (logit cols)
    txt_other_ref,   # VMEM (1, tile, d_pad)              text rows,  half 1-h, tile j
    img_other_ref,   # VMEM (1, tile, d_pad)              image rows, half 1-h, tile j
    out_ref,         # VMEM (1, 1) f32                    scalar loss (resident accumulator)
    m_rows_ref,      # VMEM (half_pad, 1) f32             running row max   (persists over j)
    l_rows_ref,      # VMEM (half_pad, 1) f32             running row sum-exp
    m_col_ref,       # VMEM (1, tile) f32                 running col max   (current col tile)
    l_col_ref,       # VMEM (1, tile) f32                 running col sum-exp
    *,
    half_real: int,  # real rows per half (= B // 2)
    batch: int,      # real batch size B
    tile: int,
    img_resident: bool,
):
    h = pl.program_id(0)          # which half / dense block (outer)
    j = pl.program_id(1)          # column tile (middle)
    i = pl.program_id(2)          # row tile (inner)
    num_j = pl.num_programs(1)
    num_i = pl.num_programs(2)

    inv_b = 1.0 / batch
    has_pad = (half_real % tile) != 0   # static -> padding masks compiled out if aligned

    # ---- init resident scalar accumulator on the very first grid step -------
    @pl.when((h == 0) & (j == 0) & (i == 0))
    def _init_out():
        out_ref[...] = jnp.zeros((1, 1), jnp.float32)

    row_start = pl.multiple_of(i * tile, tile)
    rows = pl.ds(row_start, tile)

    @pl.when(j == 0)              # first column tile for this row tile (per half)
    def _init_rows():
        m_rows_ref[rows, :] = jnp.full((tile, 1), _NEG, jnp.float32)
        l_rows_ref[rows, :] = jnp.zeros((tile, 1), jnp.float32)

    @pl.when(i == 0)              # first row tile for this column tile
    def _init_cols():
        m_col_ref[...] = jnp.full((1, tile), _NEG, jnp.float32)
        l_col_ref[...] = jnp.zeros((1, tile), jnp.float32)

    # ---- dense same-quadrant logits tile on the MXU (bf16 in, f32 accum) ----
    scale = scale_ref[0]
    if img_resident:
        img = img_ref[0, rows, :]       # slice rows out of the resident half
    else:
        img = img_ref[0]
    txt = txt_ref[0]

    s = jax.lax.dot_general(
        img, txt,
        dimension_numbers=(((1,), (1,)), ((), ())),    # img @ txt.T, NT form
        preferred_element_type=jnp.float32)
    s = s * scale        # scale the (tile, tile) tile, not the (tile, d_pad) features

    # Batch-padding masks only (the quadrant structure needs no mask anymore):
    # additive (1,tile)/(tile,1) penalties from 1-D iotas, skipped when aligned.
    if has_pad:
        col_ids = j * tile + jax.lax.broadcasted_iota(jnp.int32, (1, tile), 1)
        row_ids = row_start + jax.lax.broadcasted_iota(jnp.int32, (tile, 1), 0)
        col_pen = jnp.where(col_ids < half_real, 0.0, _NEG).astype(jnp.float32)
        row_pen = jnp.where(row_ids < half_real, 0.0, _NEG).astype(jnp.float32)
        s_row = s + col_pen    # exclude padded columns from the row LSE
        s_col = s + row_pen    # exclude padded rows    from the col LSE
    else:
        s_row = s
        s_col = s

    # ---- online logsumexp over rows (image -> text CE, this half's rows) ----
    m_r_prev = m_rows_ref[rows, :]
    l_r_prev = l_rows_ref[rows, :]
    m_r_new = jnp.maximum(m_r_prev, jnp.max(s_row, axis=1, keepdims=True))
    l_r_new = l_r_prev * jnp.exp(m_r_prev - m_r_new) + jnp.sum(
        jnp.exp(s_row - m_r_new), axis=1, keepdims=True)
    m_rows_ref[rows, :] = m_r_new
    l_rows_ref[rows, :] = l_r_new

    # ---- online logsumexp over cols (text -> image CE, this half's cols) ----
    m_c_prev = m_col_ref[...]
    l_c_prev = l_col_ref[...]
    m_c_new = jnp.maximum(m_c_prev, jnp.max(s_col, axis=0, keepdims=True))
    l_c_new = l_c_prev * jnp.exp(m_c_prev - m_c_new) + jnp.sum(
        jnp.exp(s_col - m_c_new), axis=0, keepdims=True)
    m_col_ref[...] = m_c_new
    l_col_ref[...] = l_c_new

    # ---- diagonal grid tiles: shifted-diagonal logits + CE target term ------
    @pl.when(i == j)
    def _diag_tile():
        img_f = img.astype(jnp.float32)
        txt_f = txt.astype(jnp.float32)
        txt_o = txt_other_ref[0].astype(jnp.float32)
        img_o = img_other_ref[0].astype(jnp.float32)

        # e_row[r] = logits[g(r), g(r) +/- half]: the single kept cross-quadrant
        # entry of this row; sublane-major (tile, 1).
        e_row = scale * jnp.sum(img_f * txt_o, axis=1, keepdims=True)

        # e_col[c] = logits[g(c) +/- half, g(c)]: computed as
        # ones(1,D) @ (img_other * txt).T so it lands lane-major (1, tile)
        # without an XLU transpose.
        prod_c = img_o * txt_f
        e_col = scale * jax.lax.dot_general(
            jnp.ones((1, prod_c.shape[1]), jnp.float32), prod_c,
            dimension_numbers=(((1,), (1,)), ((), ())),
            preferred_element_type=jnp.float32)

        # Fold the extra element into the running row / col LSE states.
        m_r = m_rows_ref[rows, :]
        l_r = l_rows_ref[rows, :]
        m_r2 = jnp.maximum(m_r, e_row)
        l_r2 = l_r * jnp.exp(m_r - m_r2) + jnp.exp(e_row - m_r2)
        m_rows_ref[rows, :] = m_r2
        l_rows_ref[rows, :] = l_r2

        m_c = m_col_ref[...]
        l_c = l_col_ref[...]
        m_c2 = jnp.maximum(m_c, e_col)
        l_c2 = l_c * jnp.exp(m_c - m_c2) + jnp.exp(e_col - m_c2)
        m_col_ref[...] = m_c2
        l_col_ref[...] = l_c2

        # CE target term (labels = arange(B)) = diagonal of the dense block.
        rid = jax.lax.broadcasted_iota(jnp.int32, (tile, 1), 0)
        cid = jax.lax.broadcasted_iota(jnp.int32, (1, tile), 1)
        on_diag = rid == cid
        if has_pad:
            on_diag = jnp.logical_and(on_diag, (row_start + rid) < half_real)
        out_ref[...] += -inv_b * jnp.sum(jnp.where(on_diag, s, 0.0))

    # ---- finalize row-side LSE after the last column tile of this half ------
    @pl.when(j == num_j - 1)
    def _fin_rows():
        lse_r = m_rows_ref[rows, :] + jnp.log(l_rows_ref[rows, :])
        if has_pad:
            rid = row_start + jax.lax.broadcasted_iota(jnp.int32, (tile, 1), 0)
            lse_r = jnp.where(rid < half_real, lse_r, 0.0)
        out_ref[...] += 0.5 * inv_b * jnp.sum(lse_r)

    # ---- finalize col-side LSE after the last row tile of this column tile ---
    @pl.when(i == num_i - 1)
    def _fin_cols():
        lse_c = m_col_ref[...] + jnp.log(l_col_ref[...])
        if has_pad:
            cid = j * tile + jax.lax.broadcasted_iota(jnp.int32, (1, tile), 1)
            lse_c = jnp.where(cid < half_real, lse_c, 0.0)
        out_ref[...] += 0.5 * inv_b * jnp.sum(lse_c)


def _round_up(x: int, m: int) -> int:
    return ((x + m - 1) // m) * m


def masked_clip_loss(image_features, text_features, logit_scale, *,
                     tile=None, compute_dtype=jnp.bfloat16, img_resident=None):
    """Forward pass of open_clip MaskedClipLoss (world_size == 1)."""
    B, D = image_features.shape
    assert text_features.shape == (B, D)
    assert B % 2 == 0, "Batch size must be an even number."
    half = B // 2

    # MXU-friendly tile: multiple of 128, default 256 (matches the v6e/v7x
    # 256x256 MXU and decomposes onto v5e's 128x128 MXUs).
    if tile is None:
        tile = 256 if half > 128 else 128
    tile = max(128, _round_up(tile, 128))

    half_pad = _round_up(half, tile)      # each mask quadrant padded to a tile multiple
    d_pad = _round_up(D, 128)
    n_half = half_pad // tile

    def split_pad(x):
        x = x.astype(compute_dtype)
        pad = ((0, half_pad - half), (0, d_pad - D))
        return jnp.stack([jnp.pad(x[:half], pad), jnp.pad(x[half:], pad)], axis=0)

    img_h = split_pad(image_features)     # (2, half_pad, d_pad)
    txt_h = split_pad(text_features)
    scale = jnp.reshape(jnp.asarray(logit_scale, jnp.float32), (1,))

    # Keep the current half of the image features fully VMEM-resident (loaded
    # once per half instead of re-streamed per column tile) when the
    # double-buffered block fits a conservative budget; otherwise stream tiles.
    itemsize = jnp.dtype(compute_dtype).itemsize
    if img_resident is None:
        img_resident = 2 * half_pad * d_pad * itemsize <= 16 * 1024 * 1024
    img_resident = bool(img_resident)

    if img_resident:
        img_spec = pl.BlockSpec((1, half_pad, d_pad), lambda h, j, i: (h, 0, 0))
    else:
        img_spec = pl.BlockSpec((1, tile, d_pad), lambda h, j, i: (h, i, 0))

    kernel = functools.partial(
        _masked_clip_loss_kernel,
        half_real=half, batch=B, tile=tile, img_resident=img_resident)

    out = pl.pallas_call(
        kernel,
        out_shape=jax.ShapeDtypeStruct((1, 1), jnp.float32),
        grid_spec=pltpu.PrefetchScalarGridSpec(
            num_scalar_prefetch=0,
            # (half h, column tile j, row tile i); i innermost.  Cross-quadrant
            # tiles of the masked (B, B) logits never appear in the grid.
            grid=(2, n_half, n_half),
            in_specs=[
                pl.BlockSpec(memory_space=pltpu.MemorySpace.SMEM),              # logit_scale
                img_spec,                                                        # image rows, half h
                pl.BlockSpec((1, tile, d_pad), lambda h, j, i: (h, j, 0)),       # text cols, half h
                pl.BlockSpec((1, tile, d_pad), lambda h, j, i: (1 - h, j, 0)),   # text rows, other half
                pl.BlockSpec((1, tile, d_pad), lambda h, j, i: (1 - h, j, 0)),   # image rows, other half
            ],
            out_specs=pl.BlockSpec((1, 1), lambda h, j, i: (0, 0)),
            scratch_shapes=[
                pltpu.VMEM((half_pad, 1), jnp.float32),   # running row max
                pltpu.VMEM((half_pad, 1), jnp.float32),   # running row sum-exp
                pltpu.VMEM((1, tile), jnp.float32),       # running col max
                pltpu.VMEM((1, tile), jnp.float32),       # running col sum-exp
            ],
        ),
        compiler_params=pltpu.CompilerParams(
            # Row/col online-LSE state and the scalar accumulator carry across
            # all three axes -> fully sequential grid.
            dimension_semantics=("arbitrary", "arbitrary", "arbitrary"),
            # Explicit budget (v5e default scoped limit is only 16 MiB).
            vmem_limit_bytes=64 * 1024 * 1024,
        ),
    )(scale, img_h, txt_h, txt_h, img_h)
    return out[0, 0]


def _reference(image_features, text_features, logit_scale, matmul_dtype=jnp.float32):
    """Pure-JAX port of the PyTorch MaskedClipLoss forward (world_size == 1)."""
    B = image_features.shape[0]
    half = B // 2
    ones = jnp.ones((half, half), jnp.float32)
    eye = jnp.eye(half, dtype=jnp.float32)
    mask = jnp.concatenate(
        (jnp.concatenate((ones, eye), axis=1),
         jnp.concatenate((eye, ones), axis=1)), axis=0)

    imgm = image_features.astype(matmul_dtype)
    txtm = text_features.astype(matmul_dtype)
    lpi = logit_scale * jnp.dot(imgm, txtm.T, preferred_element_type=jnp.float32)
    lpt = logit_scale * jnp.dot(txtm, imgm.T, preferred_element_type=jnp.float32)
    lpi = jnp.where(mask == 0, -jnp.inf, lpi)
    lpt = jnp.where(mask == 0, -jnp.inf, lpt)

    def ce(logits):
        lse = jax.scipy.special.logsumexp(logits, axis=-1)
        tgt = jnp.diagonal(logits)
        return jnp.mean(lse - tgt)

    return 0.5 * (ce(lpi) + ce(lpt))


if __name__ == "__main__":
    key = jax.random.PRNGKey(0)
    k1, k2, k3, k4 = jax.random.split(key, 4)
    logit_scale = jnp.float32(1.0 / 0.07)   # typical CLIP temperature

    def make(kk, b, d):
        x = jax.random.normal(kk, (b, d), jnp.float32)
        return x / jnp.linalg.norm(x, axis=-1, keepdims=True)

    # --- small case: single tile per half, f32 compute, exact semantics check --
    B, D = 8, 32
    img, txt = make(k1, B, D), make(k2, B, D)
    loss = masked_clip_loss(img, txt, logit_scale, compute_dtype=jnp.float32)
    jax.block_until_ready(loss)
    ref = _reference(img, txt, logit_scale, matmul_dtype=jnp.float32)
    assert jnp.allclose(loss, ref, rtol=1e-4, atol=1e-4), (loss, ref)

    # --- multi-tile case: ragged half (192 rows over 128-tiles), bf16 MXU path --
    # Compared against a reference whose matmul also runs in bf16 so the check
    # validates the masking / online-LSE / target logic tightly.
    B2, D2 = 384, 96
    img2, txt2 = make(k3, B2, D2), make(k4, B2, D2)
    ref2 = _reference(img2, txt2, logit_scale, matmul_dtype=jnp.bfloat16)

    loss2 = masked_clip_loss(img2, txt2, logit_scale, tile=128)          # VMEM-resident image half
    jax.block_until_ready(loss2)
    assert jnp.allclose(loss2, ref2, rtol=2e-3, atol=2e-3), (loss2, ref2)

    loss3 = masked_clip_loss(img2, txt2, logit_scale, tile=128,
                             img_resident=False)                         # streamed image tiles
    jax.block_until_ready(loss3)
    assert jnp.allclose(loss3, ref2, rtol=2e-3, atol=2e-3), (loss3, ref2)

    print("KERNEL_OK")
</pallas_src>

<mosaic_0001>
module attributes {stable_mosaic.version = 11 : i64} {
  func.func @_masked_clip_loss_kernel(%arg0: i32, %arg1: i32, %arg2: i32, %arg3: memref<1xf32, #tpu.memory_space<smem>>, %arg4: memref<1x128x128xf32, #tpu.memory_space<vmem>>, %arg5: memref<1x128x128xf32, #tpu.memory_space<vmem>>, %arg6: memref<1x128x128xf32, #tpu.memory_space<vmem>>, %arg7: memref<1x128x128xf32, #tpu.memory_space<vmem>>, %arg8: memref<1x1xf32, #tpu.memory_space<vmem>>, %arg9: memref<128x1xf32, #tpu.memory_space<vmem>>, %arg10: memref<128x1xf32, #tpu.memory_space<vmem>>, %arg11: memref<1x128xf32, #tpu.memory_space<vmem>>, %arg12: memref<1x128xf32, #tpu.memory_space<vmem>>) attributes {dimension_semantics = [#tpu.dimension_semantics<arbitrary>, #tpu.dimension_semantics<arbitrary>, #tpu.dimension_semantics<arbitrary>], iteration_bounds = array<i64: 2, 1, 1>, scalar_prefetch = 0 : i64, scratch_operands = 4 : i64, tpu.core_type = #tpu.core_type<tc>, window_params = [{transform_indices = @transform_0, window_bounds = array<i64: 1>}, {transform_indices = @transform_1, window_bounds = array<i64: 1, 128, 128>}, {transform_indices = @transform_2, window_bounds = array<i64: 1, 128, 128>}, {transform_indices = @transform_3, window_bounds = array<i64: 1, 128, 128>}, {transform_indices = @transform_4, window_bounds = array<i64: 1, 128, 128>}, {pipeline_mode = #tpu.pipeline_mode<synchronous>, transform_indices = @transform_5, window_bounds = array<i64: 1, 1>}]} {
    %c0_i32 = arith.constant 0 : i32
    %0 = arith.cmpi eq, %arg0, %c0_i32 : i32
    %c0_i32_0 = arith.constant 0 : i32
    %1 = arith.cmpi eq, %arg1, %c0_i32_0 : i32
    %2 = arith.andi %0, %1 : i1
    %c0_i32_1 = arith.constant 0 : i32
    %3 = arith.cmpi eq, %arg2, %c0_i32_1 : i32
    %4 = arith.andi %2, %3 : i1
    %5 = arith.extui %4 : i1 to i32
    %c0_i32_2 = arith.constant 0 : i32
    %6 = arith.cmpi ne, %5, %c0_i32_2 : i32
    scf.if %6 {
      %cst_39 = arith.constant 0.000000e+00 : f32
      %90 = vector.broadcast %cst_39 : f32 to vector<1x1xf32>
      %c0_40 = arith.constant 0 : index
      %c0_41 = arith.constant 0 : index
      %91 = vector.load %arg8[%c0_40, %c0_41] : memref<1x1xf32, #tpu.memory_space<vmem>>, vector<1x1xf32>
      tpu.vector_store %arg8[%c0_40, %c0_41], %90 {strides = array<i32>} : memref<1x1xf32, #tpu.memory_space<vmem>>, vector<1x1xf32>,
    } else {
    }
    %c128_i32 = arith.constant 128 : i32
    %7 = arith.muli %arg2, %c128_i32 : i32
    %8 = tpu.assume_multiple %7, 128 : i32
    %c0_i32_3 = arith.constant 0 : i32
    %9 = arith.cmpi eq, %arg1, %c0_i32_3 : i32
    %10 = arith.extui %9 : i1 to i32
    %c0_i32_4 = arith.constant 0 : i32
    %11 = arith.cmpi ne, %10, %c0_i32_4 : i32
    scf.if %11 {
      %cst_39 = arith.constant -1.000000e+30 : f32
      %90 = vector.broadcast %cst_39 : f32 to vector<128x1xf32>
      %91 = arith.index_cast %8 : i32 to index
      %c0_40 = arith.constant 0 : index
      %92 = vector.load %arg9[%91, %c0_40] : memref<128x1xf32, #tpu.memory_space<vmem>>, vector<128x1xf32>
      tpu.vector_store %arg9[%91, %c0_40], %90 {strides = array<i32>} : memref<128x1xf32, #tpu.memory_space<vmem>>, vector<128x1xf32>,
      %cst_41 = arith.constant 0.000000e+00 : f32
      %93 = vector.broadcast %cst_41 : f32 to vector<128x1xf32>
      %94 = arith.index_cast %8 : i32 to index
      %c0_42 = arith.constant 0 : index
      %95 = vector.load %arg10[%94, %c0_42] : memref<128x1xf32, #tpu.memory_space<vmem>>, vector<128x1xf32>
      tpu.vector_store %arg10[%94, %c0_42], %93 {strides = array<i32>} : memref<128x1xf32, #tpu.memory_space<vmem>>, vector<128x1xf32>,
    } else {
    }
    %c0_i32_5 = arith.constant 0 : i32
    %12 = arith.cmpi eq, %arg2, %c0_i32_5 : i32
    %13 = arith.extui %12 : i1 to i32
    %c0_i32_6 = arith.constant 0 : i32
    %14 = arith.cmpi ne, %13, %c0_i32_6 : i32
    scf.if %14 {
      %cst_39 = arith.constant -1.000000e+30 : f32
      %90 = vector.broadcast %cst_39 : f32 to vector<1x128xf32>
      %c0_40 = arith.constant 0 : index
      %c0_41 = arith.constant 0 : index
      %91 = vector.load %arg11[%c0_40, %c0_41] : memref<1x128xf32, #tpu.memory_space<vmem>>, vector<1x128xf32>
      tpu.vector_store %arg11[%c0_40, %c0_41], %90 {strides = array<i32>} : memref<1x128xf32, #tpu.memory_space<vmem>>, vector<1x128xf32>,
      %cst_42 = arith.constant 0.000000e+00 : f32
      %92 = vector.broadcast %cst_42 : f32 to vector<1x128xf32>
      %c0_43 = arith.constant 0 : index
      %c0_44 = arith.constant 0 : index
      %93 = vector.load %arg12[%c0_43, %c0_44] : memref<1x128xf32, #tpu.memory_space<vmem>>, vector<1x128xf32>
      tpu.vector_store %arg12[%c0_43, %c0_44], %92 {strides = array<i32>} : memref<1x128xf32, #tpu.memory_space<vmem>>, vector<1x128xf32>,
    } else {
    }
    %c0 = arith.constant 0 : index
    %15 = memref.load %arg3[%c0] : memref<1xf32, #tpu.memory_space<smem>>
    %c0_7 = arith.constant 0 : index
    %16 = arith.index_cast %8 : i32 to index
    %c0_8 = arith.constant 0 : index
    %17 = vector.load %arg4[%c0_7, %16, %c0_8] : memref<1x128x128xf32, #tpu.memory_space<vmem>>, vector<1x128x128xf32>
    %18 = vector.shape_cast %17 : vector<1x128x128xf32> to vector<128x128xf32>
    %c0_9 = arith.constant 0 : index
    %c0_10 = arith.constant 0 : index
    %c0_11 = arith.constant 0 : index
    %19 = vector.load %arg5[%c0_9, %c0_10, %c0_11] : memref<1x128x128xf32, #tpu.memory_space<vmem>>, vector<1x128x128xf32>
    %20 = vector.shape_cast %19 : vector<1x128x128xf32> to vector<128x128xf32>
    %cst = arith.constant dense<0.000000e+00> : vector<128x128xf32>
    %21 = tpu.matmul %18, %20, %cst {dimension_numbers = #tpu.dot_dimension_numbers<[1], [1], [0], [0], [0, 0, 1, 0], [], []>} : vector<128x128xf32>, vector<128x128xf32>, vector<128x128xf32> -> vector<128x128xf32>
    %22 = vector.broadcast %15 : f32 to vector<128x128xf32>
    %23 = arith.mulf %21, %22 : vector<128x128xf32>
    %c128_i32_12 = arith.constant 128 : i32
    %24 = arith.muli %arg1, %c128_i32_12 : i32
    %25 = tpu.iota {dimensions = array<i32: 1>} : vector<1x128xi32>
    %26 = vector.broadcast %24 : i32 to vector<1x128xi32>
    %27 = arith.addi %26, %25 : vector<1x128xi32>
    %28 = tpu.iota {dimensions = array<i32: 0>} : vector<128x1xi32>
    %29 = vector.broadcast %8 : i32 to vector<128x1xi32>
    %30 = arith.addi %29, %28 : vector<128x1xi32>
    %c4_i32 = arith.constant 4 : i32
    %31 = vector.broadcast %c4_i32 : i32 to vector<1x128xi32>
    %32 = arith.cmpi slt, %27, %31 : vector<1x128xi32>
    %cst_13 = arith.constant 0.000000e+00 : f32
    %cst_14 = arith.constant -1.000000e+30 : f32
    %33 = vector.broadcast %cst_13 : f32 to vector<1x128xf32>
    %34 = vector.broadcast %cst_14 : f32 to vector<1x128xf32>
    %35 = arith.select %32, %33, %34 : vector<1x128xi1>, vector<1x128xf32>
    %c4_i32_15 = arith.constant 4 : i32
    %36 = vector.broadcast %c4_i32_15 : i32 to vector<128x1xi32>
    %37 = arith.cmpi slt, %30, %36 : vector<128x1xi32>
    %cst_16 = arith.constant 0.000000e+00 : f32
    %cst_17 = arith.constant -1.000000e+30 : f32
    %38 = vector.broadcast %cst_16 : f32 to vector<128x1xf32>
    %39 = vector.broadcast %cst_17 : f32 to vector<128x1xf32>
    %40 = arith.select %37, %38, %39 : vector<128x1xi1>, vector<128x1xf32>
    %41 = vector.broadcast %35 : vector<1x128xf32> to vector<128x128xf32>
    %42 = arith.addf %23, %41 : vector<128x128xf32>
    %43 = vector.broadcast %40 : vector<128x1xf32> to vector<128x128xf32>
    %44 = arith.addf %23, %43 : vector<128x128xf32>
    %45 = arith.index_cast %8 : i32 to index
    %c0_18 = arith.constant 0 : index
    %46 = vector.load %arg9[%45, %c0_18] : memref<128x1xf32, #tpu.memory_space<vmem>>, vector<128x1xf32>
    %47 = arith.index_cast %8 : i32 to index
    %c0_19 = arith.constant 0 : index
    %48 = vector.load %arg10[%47, %c0_19] : memref<128x1xf32, #tpu.memory_space<vmem>>, vector<128x1xf32>
    %cst_20 = arith.constant dense<0xFF800000> : vector<128xf32>
    %49 = vector.multi_reduction <maximumf>, %42, %cst_20 [1] : vector<128x128xf32> to vector<128xf32>
    %50 = vector.shape_cast %49 : vector<128xf32> to vector<128x1xf32>
    %51 = arith.maximumf %46, %50 : vector<128x1xf32>
    %52 = arith.subf %46, %51 : vector<128x1xf32>
    %53 = math.exp %52 : vector<128x1xf32>
    %54 = arith.mulf %48, %53 : vector<128x1xf32>
    %55 = vector.broadcast %51 : vector<128x1xf32> to vector<128x128xf32>
    %56 = arith.subf %42, %55 : vector<128x128xf32>
    %57 = math.exp %56 : vector<128x128xf32>
    %cst_21 = arith.constant dense<0.000000e+00> : vector<128xf32>
    %58 = vector.multi_reduction <add>, %57, %cst_21 [1] : vector<128x128xf32> to vector<128xf32>
    %59 = vector.shape_cast %58 : vector<128xf32> to vector<128x1xf32>
    %60 = arith.addf %54, %59 : vector<128x1xf32>
    %61 = arith.index_cast %8 : i32 to index
    %c0_22 = arith.constant 0 : index
    %62 = vector.load %arg9[%61, %c0_22] : memref<128x1xf32, #tpu.memory_space<vmem>>, vector<128x1xf32>
    tpu.vector_store %arg9[%61, %c0_22], %51 {strides = array<i32>} : memref<128x1xf32, #tpu.memory_space<vmem>>, vector<128x1xf32>,
    %63 = arith.index_cast %8 : i32 to index
    %c0_23 = arith.constant 0 : index
    %64 = vector.load %arg10[%63, %c0_23] : memref<128x1xf32, #tpu.memory_space<vmem>>, vector<128x1xf32>
    tpu.vector_store %arg10[%63, %c0_23], %60 {strides = array<i32>} : memref<128x1xf32, #tpu.memory_space<vmem>>, vector<128x1xf32>,
    %c0_24 = arith.constant 0 : index
    %c0_25 = arith.constant 0 : index
    %65 = vector.load %arg11[%c0_24, %c0_25] : memref<1x128xf32, #tpu.memory_space<vmem>>, vector<1x128xf32>
    %c0_26 = arith.constant 0 : index
    %c0_27 = arith.constant 0 : index
    %66 = vector.load %arg12[%c0_26, %c0_27] : memref<1x128xf32, #tpu.memory_space<vmem>>, vector<1x128xf32>
    %cst_28 = arith.constant dense<0xFF800000> : vector<128xf32>
    %67 = vector.multi_reduction <maximumf>, %44, %cst_28 [0] : vector<128x128xf32> to vector<128xf32>
    %68 = vector.shape_cast %67 : vector<128xf32> to vector<1x128xf32>
    %69 = arith.maximumf %65, %68 : vector<1x128xf32>
    %70 = arith.subf %65, %69 : vector<1x128xf32>
    %71 = math.exp %70 : vector<1x128xf32>
    %72 = arith.mulf %66, %71 : vector<1x128xf32>
    %73 = vector.broadcast %69 : vector<1x128xf32> to vector<128x128xf32>
    %74 = arith.subf %44, %73 : vector<128x128xf32>
    %75 = math.exp %74 : vector<128x128xf32>
    %cst_29 = arith.constant dense<0.000000e+00> : vector<128xf32>
    %76 = vector.multi_reduction <add>, %75, %cst_29 [0] : vector<128x128xf32> to vector<128xf32>
    %77 = vector.shape_cast %76 : vector<128xf32> to vector<1x128xf32>
    %78 = arith.addf %72, %77 : vector<1x128xf32>
    %c0_30 = arith.constant 0 : index
    %c0_31 = arith.constant 0 : index
    %79 = vector.load %arg11[%c0_30, %c0_31] : memref<1x128xf32, #tpu.memory_space<vmem>>, vector<1x128xf32>
    tpu.vector_store %arg11[%c0_30, %c0_31], %69 {strides = array<i32>} : memref<1x128xf32, #tpu.memory_space<vmem>>, vector<1x128xf32>,
    %c0_32 = arith.constant 0 : index
    %c0_33 = arith.constant 0 : index
    %80 = vector.load %arg12[%c0_32, %c0_33] : memref<1x128xf32, #tpu.memory_space<vmem>>, vector<1x128xf32>
    tpu.vector_store %arg12[%c0_32, %c0_33], %78 {strides = array<i32>} : memref<1x128xf32, #tpu.memory_space<vmem>>, vector<1x128xf32>,
    %81 = arith.cmpi eq, %arg2, %arg1 : i32
    %82 = arith.extui %81 : i1 to i32
    %c0_i32_34 = arith.constant 0 : i32
    %83 = arith.cmpi ne, %82, %c0_i32_34 : i32
    scf.if %83 {
      %c0_39 = arith.constant 0 : index
      %c0_40 = arith.constant 0 : index
      %c0_41 = arith.constant 0 : index
      %90 = vector.load %arg6[%c0_39, %c0_40, %c0_41] : memref<1x128x128xf32, #tpu.memory_space<vmem>>, vector<1x128x128xf32>
      %91 = vector.shape_cast %90 : vector<1x128x128xf32> to vector<128x128xf32>
      %c0_42 = arith.constant 0 : index
      %c0_43 = arith.constant 0 : index
      %c0_44 = arith.constant 0 : index
      %92 = vector.load %arg7[%c0_42, %c0_43, %c0_44] : memref<1x128x128xf32, #tpu.memory_space<vmem>>, vector<1x128x128xf32>
      %93 = vector.shape_cast %92 : vector<1x128x128xf32> to vector<128x128xf32>
      %94 = arith.mulf %18, %91 : vector<128x128xf32>
      %cst_45 = arith.constant dense<0.000000e+00> : vector<128xf32>
      %95 = vector.multi_reduction <add>, %94, %cst_45 [1] : vector<128x128xf32> to vector<128xf32>
      %96 = vector.shape_cast %95 : vector<128xf32> to vector<128x1xf32>
      %97 = vector.broadcast %15 : f32 to vector<128x1xf32>
      %98 = arith.mulf %97, %96 : vector<128x1xf32>
      %99 = arith.mulf %93, %20 : vector<128x128xf32>
      %cst_46 = arith.constant 1.000000e+00 : f32
      %100 = vector.broadcast %cst_46 : f32 to vector<1x128xf32>
      %cst_47 = arith.constant dense<0.000000e+00> : vector<1x128xf32>
      %101 = tpu.matmul %100, %99, %cst_47 {dimension_numbers = #tpu.dot_dimension_numbers<[1], [1], [0], [0], [0, 0, 1, 0], [], []>} : vector<1x128xf32>, vector<128x128xf32>, vector<1x128xf32> -> vector<1x128xf32>
      %102 = vector.broadcast %15 : f32 to vector<1x128xf32>
      %103 = arith.mulf %102, %101 : vector<1x128xf32>
      %104 = arith.index_cast %8 : i32 to index
      %c0_48 = arith.constant 0 : index
      %105 = vector.load %arg9[%104, %c0_48] : memref<128x1xf32, #tpu.memory_space<vmem>>, vector<128x1xf32>
      %106 = arith.index_cast %8 : i32 to index
      %c0_49 = arith.constant 0 : index
      %107 = vector.load %arg10[%106, %c0_49] : memref<128x1xf32, #tpu.memory_space<vmem>>, vector<128x1xf32>
      %108 = arith.maximumf %105, %98 : vector<128x1xf32>
      %109 = arith.subf %105, %108 : vector<128x1xf32>
      %110 = math.exp %109 : vector<128x1xf32>
      %111 = arith.mulf %107, %110 : vector<128x1xf32>
      %112 = arith.subf %98, %108 : vector<128x1xf32>
      %113 = math.exp %112 : vector<128x1xf32>
      %114 = arith.addf %111, %113 : vector<128x1xf32>
      %115 = arith.index_cast %8 : i32 to index
      %c0_50 = arith.constant 0 : index
      %116 = vector.load %arg9[%115, %c0_50] : memref<128x1xf32, #tpu.memory_space<vmem>>, vector<128x1xf32>
      tpu.vector_store %arg9[%115, %c0_50], %108 {strides = array<i32>} : memref<128x1xf32, #tpu.memory_space<vmem>>, vector<128x1xf32>,
      %117 = arith.index_cast %8 : i32 to index
      %c0_51 = arith.constant 0 : index
      %118 = vector.load %arg10[%117, %c0_51] : memref<128x1xf32, #tpu.memory_space<vmem>>, vector<128x1xf32>
      tpu.vector_store %arg10[%117, %c0_51], %114 {strides = array<i32>} : memref<128x1xf32, #tpu.memory_space<vmem>>, vector<128x1xf32>,
      %c0_52 = arith.constant 0 : index
      %c0_53 = arith.constant 0 : index
      %119 = vector.load %arg11[%c0_52, %c0_53] : memref<1x128xf32, #tpu.memory_space<vmem>>, vector<1x128xf32>
      %c0_54 = arith.constant 0 : index
      %c0_55 = arith.constant 0 : index
      %120 = vector.load %arg12[%c0_54, %c0_55] : memref<1x128xf32, #tpu.memory_space<vmem>>, vector<1x128xf32>
      %121 = arith.maximumf %119, %103 : vector<1x128xf32>
      %122 = arith.subf %119, %121 : vector<1x128xf32>
      %123 = math.exp %122 : vector<1x128xf32>
      %124 = arith.mulf %120, %123 : vector<1x128xf32>
      %125 = arith.subf %103, %121 : vector<1x128xf32>
      %126 = math.exp %125 : vector<1x128xf32>
      %127 = arith.addf %124, %126 : vector<1x128xf32>
      %c0_56 = arith.constant 0 : index
      %c0_57 = arith.constant 0 : index
      %128 = vector.load %arg11[%c0_56, %c0_57] : memref<1x128xf32, #tpu.memory_space<vmem>>, vector<1x128xf32>
      tpu.vector_store %arg11[%c0_56, %c0_57], %121 {strides = array<i32>} : memref<1x128xf32, #tpu.memory_space<vmem>>, vector<1x128xf32>,
      %c0_58 = arith.constant 0 : index
      %c0_59 = arith.constant 0 : index
      %129 = vector.load %arg12[%c0_58, %c0_59] : memref<1x128xf32, #tpu.memory_space<vmem>>, vector<1x128xf32>
      tpu.vector_store %arg12[%c0_58, %c0_59], %127 {strides = array<i32>} : memref<1x128xf32, #tpu.memory_space<vmem>>, vector<1x128xf32>,
      %130 = tpu.iota {dimensions = array<i32: 0>} : vector<128x1xi32>
      %131 = tpu.iota {dimensions = array<i32: 1>} : vector<1x128xi32>
      %132 = vector.broadcast %130 : vector<128x1xi32> to vector<128x128xi32>
      %133 = vector.broadcast %131 : vector<1x128xi32> to vector<128x128xi32>
      %134 = arith.cmpi eq, %132, %133 : vector<128x128xi32>
      %135 = vector.broadcast %8 : i32 to vector<128x1xi32>
      %136 = arith.addi %135, %130 : vector<128x1xi32>
      %c4_i32_60 = arith.constant 4 : i32
      %137 = vector.broadcast %c4_i32_60 : i32 to vector<128x1xi32>
      %138 = arith.cmpi slt, %136, %137 : vector<128x1xi32>
      %139 = vector.broadcast %138 : vector<128x1xi1> to vector<128x128xi1>
      %140 = arith.andi %134, %139 : vector<128x128xi1>
      %c0_61 = arith.constant 0 : index
      %c0_62 = arith.constant 0 : index
      %141 = vector.load %arg8[%c0_61, %c0_62] : memref<1x1xf32, #tpu.memory_space<vmem>>, vector<1x1xf32>
      %cst_63 = arith.constant 0.000000e+00 : f32
      %142 = vector.broadcast %cst_63 : f32 to vector<128x128xf32>
      %143 = arith.select %140, %23, %142 : vector<128x128xi1>, vector<128x128xf32>
      %144 = vector.shape_cast %143 : vector<128x128xf32> to vector<1x128x128xf32>
      %cst_64 = arith.constant dense<0.000000e+00> : vector<1xf32>
      %145 = vector.multi_reduction <add>, %144, %cst_64 [1, 2] : vector<1x128x128xf32> to vector<1xf32>
      %146 = vector.shape_cast %145 : vector<1xf32> to vector<1x1x1xf32>
      %147 = vector.extract %146[0, 0, 0] : f32 from vector<1x1x1xf32>
      %cst_65 = arith.constant -1.250000e-01 : f32
      %148 = arith.mulf %cst_65, %147 : f32
      %149 = vector.broadcast %148 : f32 to vector<1x1xf32>
      %150 = arith.addf %141, %149 : vector<1x1xf32>
      %c0_66 = arith.constant 0 : index
      %c0_67 = arith.constant 0 : index
      %151 = vector.load %arg8[%c0_66, %c0_67] : memref<1x1xf32, #tpu.memory_space<vmem>>, vector<1x1xf32>
      tpu.vector_store %arg8[%c0_66, %c0_67], %150 {strides = array<i32>} : memref<1x1xf32, #tpu.memory_space<vmem>>, vector<1x1xf32>,
    } else {
    }
    %c0_i32_35 = arith.constant 0 : i32
    %84 = arith.cmpi eq, %arg1, %c0_i32_35 : i32
    %85 = arith.extui %84 : i1 to i32
    %c0_i32_36 = arith.constant 0 : i32
    %86 = arith.cmpi ne, %85, %c0_i32_36 : i32
    scf.if %86 {
      %90 = arith.index_cast %8 : i32 to index
      %c0_39 = arith.constant 0 : index
      %91 = vector.load %arg9[%90, %c0_39] : memref<128x1xf32, #tpu.memory_space<vmem>>, vector<128x1xf32>
      %92 = arith.index_cast %8 : i32 to index
      %c0_40 = arith.constant 0 : index
      %93 = vector.load %arg10[%92, %c0_40] : memref<128x1xf32, #tpu.memory_space<vmem>>, vector<128x1xf32>
      %94 = math.log %93 : vector<128x1xf32>
      %95 = arith.addf %91, %94 : vector<128x1xf32>
      %96 = tpu.iota {dimensions = array<i32: 0>} : vector<128x1xi32>
      %97 = vector.broadcast %8 : i32 to vector<128x1xi32>
      %98 = arith.addi %97, %96 : vector<128x1xi32>
      %c4_i32_41 = arith.constant 4 : i32
      %99 = vector.broadcast %c4_i32_41 : i32 to vector<128x1xi32>
      %100 = arith.cmpi slt, %98, %99 : vector<128x1xi32>
      %cst_42 = arith.constant 0.000000e+00 : f32
      %101 = vector.broadcast %cst_42 : f32 to vector<128x1xf32>
      %102 = arith.select %100, %95, %101 : vector<128x1xi1>, vector<128x1xf32>
      %c0_43 = arith.constant 0 : index
      %c0_44 = arith.constant 0 : index
      %103 = vector.load %arg8[%c0_43, %c0_44] : memref<1x1xf32, #tpu.memory_space<vmem>>, vector<1x1xf32>
      %104 = vector.shape_cast %102 : vector<128x1xf32> to vector<1x128x1xf32>
      %cst_45 = arith.constant dense<0.000000e+00> : vector<1xf32>
      %105 = vector.multi_reduction <add>, %104, %cst_45 [1, 2] : vector<1x128x1xf32> to vector<1xf32>
      %106 = vector.shape_cast %105 : vector<1xf32> to vector<1x1x1xf32>
      %107 = vector.extract %106[0, 0, 0] : f32 from vector<1x1x1xf32>
      %cst_46 = arith.constant 6.250000e-02 : f32
      %108 = arith.mulf %cst_46, %107 : f32
      %109 = vector.broadcast %108 : f32 to vector<1x1xf32>
      %110 = arith.addf %103, %109 : vector<1x1xf32>
      %c0_47 = arith.constant 0 : index
      %c0_48 = arith.constant 0 : index
      %111 = vector.load %arg8[%c0_47, %c0_48] : memref<1x1xf32, #tpu.memory_space<vmem>>, vector<1x1xf32>
      tpu.vector_store %arg8[%c0_47, %c0_48], %110 {strides = array<i32>} : memref<1x1xf32, #tpu.memory_space<vmem>>, vector<1x1xf32>,
    } else {
    }
    %c0_i32_37 = arith.constant 0 : i32
    %87 = arith.cmpi eq, %arg2, %c0_i32_37 : i32
    %88 = arith.extui %87 : i1 to i32
    %c0_i32_38 = arith.constant 0 : i32
    %89 = arith.cmpi ne, %88, %c0_i32_38 : i32
    scf.if %89 {
      %c0_39 = arith.constant 0 : index
      %c0_40 = arith.constant 0 : index
      %90 = vector.load %arg11[%c0_39, %c0_40] : memref<1x128xf32, #tpu.memory_space<vmem>>, vector<1x128xf32>
      %c0_41 = arith.constant 0 : index
      %c0_42 = arith.constant 0 : index
      %91 = vector.load %arg12[%c0_41, %c0_42] : memref<1x128xf32, #tpu.memory_space<vmem>>, vector<1x128xf32>
      %92 = math.log %91 : vector<1x128xf32>
      %93 = arith.addf %90, %92 : vector<1x128xf32>
      %c128_i32_43 = arith.constant 128 : i32
      %94 = arith.muli %arg1, %c128_i32_43 : i32
      %95 = tpu.iota {dimensions = array<i32: 1>} : vector<1x128xi32>
      %96 = vector.broadcast %94 : i32 to vector<1x128xi32>
      %97 = arith.addi %96, %95 : vector<1x128xi32>
      %c4_i32_44 = arith.constant 4 : i32
      %98 = vector.broadcast %c4_i32_44 : i32 to vector<1x128xi32>
      %99 = arith.cmpi slt, %97, %98 : vector<1x128xi32>
      %cst_45 = arith.constant 0.000000e+00 : f32
      %100 = vector.broadcast %cst_45 : f32 to vector<1x128xf32>
      %101 = arith.select %99, %93, %100 : vector<1x128xi1>, vector<1x128xf32>
      %c0_46 = arith.constant 0 : index
      %c0_47 = arith.constant 0 : index
      %102 = vector.load %arg8[%c0_46, %c0_47] : memref<1x1xf32, #tpu.memory_space<vmem>>, vector<1x1xf32>
      %103 = vector.shape_cast %101 : vector<1x128xf32> to vector<1x1x128xf32>
      %cst_48 = arith.constant dense<0.000000e+00> : vector<1xf32>
      %104 = vector.multi_reduction <add>, %103, %cst_48 [1, 2] : vector<1x1x128xf32> to vector<1xf32>
      %105 = vector.shape_cast %104 : vector<1xf32> to vector<1x1x1xf32>
      %106 = vector.extract %105[0, 0, 0] : f32 from vector<1x1x1xf32>
      %cst_49 = arith.constant 6.250000e-02 : f32
      %107 = arith.mulf %cst_49, %106 : f32
      %108 = vector.broadcast %107 : f32 to vector<1x1xf32>
      %109 = arith.addf %102, %108 : vector<1x1xf32>
      %c0_50 = arith.constant 0 : index
      %c0_51 = arith.constant 0 : index
      %110 = vector.load %arg8[%c0_50, %c0_51] : memref<1x1xf32, #tpu.memory_space<vmem>>, vector<1x1xf32>
      tpu.vector_store %arg8[%c0_50, %c0_51], %109 {strides = array<i32>} : memref<1x1xf32, #tpu.memory_space<vmem>>, vector<1x1xf32>,
    } else {
    }
    return
  }
  func.func @transform_0(%arg0: i32, %arg1: i32, %arg2: i32) -> i32 {
    %c0_i32 = arith.constant 0 : i32
    %c0_i32_0 = arith.constant 0 : i32
    return %c0_i32 : i32
  }
  func.func @transform_1(%arg0: i32, %arg1: i32, %arg2: i32) -> (i32, i32, i32) {
    %c0_i32 = arith.constant 0 : i32
    %c0_i32_0 = arith.constant 0 : i32
    %c0_i32_1 = arith.constant 0 : i32
    return %arg0, %c0_i32, %c0_i32_0 : i32, i32, i32
  }
  func.func @transform_2(%arg0: i32, %arg1: i32, %arg2: i32) -> (i32, i32, i32) {
    %c0_i32 = arith.constant 0 : i32
    %c0_i32_0 = arith.constant 0 : i32
    return %arg0, %arg1, %c0_i32 : i32, i32, i32
  }
  func.func @transform_3(%arg0: i32, %arg1: i32, %arg2: i32) -> (i32, i32, i32) {
    %c1_i32 = arith.constant 1 : i32
    %0 = arith.subi %c1_i32, %arg0 : i32
    %c0_i32 = arith.constant 0 : i32
    %c0_i32_0 = arith.constant 0 : i32
    return %0, %arg1, %c0_i32 : i32, i32, i32
  }
  func.func @transform_4(%arg0: i32, %arg1: i32, %arg2: i32) -> (i32, i32, i32) {
    %c1_i32 = arith.constant 1 : i32
    %0 = arith.subi %c1_i32, %arg0 : i32
    %c0_i32 = arith.constant 0 : i32
    %c0_i32_0 = arith.constant 0 : i32
    return %0, %arg1, %c0_i32 : i32, i32, i32
  }
  func.func @transform_5(%arg0: i32, %arg1: i32, %arg2: i32) -> (i32, i32) {
    %c0_i32 = arith.constant 0 : i32
    %c0_i32_0 = arith.constant 0 : i32
    %c0_i32_1 = arith.constant 0 : i32
    return %c0_i32, %c0_i32_0 : i32, i32
  }
}

</mosaic_0001>

<bundles_post_ra>
// kernel: tpu_custom_call.1
= control target key start
LH: loop header
LB: loop body
LE: loop exit
PB: predicated region body
PF: predicated region fallthrough
CT: control target
= control target key end

     0   :  { %s3993_s0 = inlined_call_operand.<no memory space> [shape: f32[1], index: 0, kind: input, shape index: {}]   ;;  %s3994_s1 = inlined_call_operand.hbm [shape: f32[2,128,128], index: 1, kind: input, shape index: {}]   ;;  %s3995_s2 = inlined_call_operand.hbm [shape: f32[2,128,128], index: 2, kind: input, shape index: {}]   ;;  %s3996_s3 = inlined_call_operand.hbm [shape: f32[2,128,128], index: 3, kind: input, shape index: {}]   ;;  %s3997_s4 = inlined_call_operand.hbm [shape: f32[2,128,128], index: 4, kind: input, shape index: {}]   ;;  %s3998_s5 = inlined_call_operand.hbm [shape: f32[1,1], index: 5, kind: output, shape index: {}]  }
   0x1   :  { %4017 = sst [smem:[#allocation36_spill]] %s3994_s1 }
   0x2   :  { %4018 = sst [smem:[#allocation37_spill]] %s3995_s2 }
   0x3   :  { %4019 = sst [smem:[#allocation38_spill]] %s3998_s5 }
   0x4   :  { %10 = sst [smem:[#allocation6]] %s3993_s0 }
   0x5   :  { %11 = vsyncpa [#allocation8], 0 }
   0x6   :  { %13 = vsyncpa [#allocation8 + $0x1], 0 }
   0x7   :  { %14 = vsyncpa [#allocation11], 0 }
   0x8   :  { %16 = vsyncpa [#allocation11 + $0x1], 0 }
   0x9   :  { %17 = vsyncpa [#allocation14], 0 }
   0xa   :  { %19 = vsyncpa [#allocation14 + $0x1], 0 }
   0xb   :  { %20 = vsyncpa [#allocation9], 0  ;;  %s2784_s20 = smov 0   ;;  %s2786_s21 = smov 0  }
   0xc   :  { %s2788_s22 = smov 0   ;;  %s2790_s23 = smov 0  }
   0xd   :  { %s2792_s24 = smov 0   ;;  %s2794_s25 = smov 0  }
   0xe   :  { %s2796_s0 = smov 0   ;;  %s2798_s26 = smov 0  }
   0xf   :  { %s2800_s27 = smov 0  }
  0x10 LB: > { %s2828_s28 = sadd.s32 4294967295, %s2736_s27   ;;  %s45_s29 = sadd.s32 1, %s2732_s26  ;;  %s2736_s27 = sphi %s2800_s27, %s26_s27   ;;  %s2732_s26 = sphi %s2798_s26, %s4080_s26   ;;  %s2728_s0 = sphi %s2796_s0, %s4079_s0   ;;  %s2724_s25 = sphi %s2794_s25, %s4078_s25   ;;  %s2720_s24 = sphi %s2792_s24, %s4077_s24   ;;  %s2716_s23 = sphi %s2790_s23, %s4076_s23   ;;  %s2712_s22 = sphi %s2788_s22, %s4075_s22   ;;  %s2708_s21 = sphi %s2786_s21, %s4074_s21   ;;  %s2704_s20 = sphi %s2784_s20, %s4073_s20  }
  0x11   : > { %p47_p0 = scmp.ge.s32.totalorder %s45_s29, 2  ;;  %s73_s30 = sadd.s32 1, %s2724_s25 }
  0x12   : > { %p80_p1 = scmp.ne.s32.totalorder %s2724_s25, %s2720_s24  ;;  %p81_p2 = scmp.eq.s32.totalorder %s2736_s27, 0 }
  0x13   : > { %s4082_s29 = smov (%p47_p0, %s45_s29), 0  ;;  %p86_p4 = scmp.ne.s32.totalorder %s2720_s24, %s2716_s23 }
  0x14   : > { %p82_p3 = por %p81_p2, %p80_p1  ;;  %s70_s6 = ssub.s32 %s2732_s26, %s4082_s29 }
  0x15   : > { %p87_p5 = scmp.eq.s32.totalorder %s2828_s28, 0  ;;  %p71_p6 = scmp.eq.s32.totalorder %s70_s6, 0 }
  0x16   : > { %p2254_p8 = scmp.lt.s32.totalorder %s2736_s27, 2  ;;  %s3999_s9 = sand.u32 1, %s2724_s25  }
  0x17   : > { %p2845_p7 = por %p87_p5, %p86_p4  ;;  %s2077_s10 = sshll.u32 %s2732_s26, 11 }
  0x18   : > { %s2851_s8 = scalar_select %p71_p6, %s2724_s25, %s73_s30  }
  0x19   : > { %s2857_s11 = sshll.u32 %s3999_s9, 7  ;;  %p2861_p9 = pnand %p2254_p8, %p82_p3 }
  0x1a   : > { %4021 = sst [smem:[#allocation21_spill]] %s2851_s8  ;;  %s243_s13 = sand.u32 1, %s2736_s27  }
  0x1b   : > { %s4023_s2 = sld [smem:[#allocation37_spill]]  ;;  %s247_s17 = scalar_lea.vmem [#allocation10], %s2857_s11 }
  0x1c   : > { %s256_s18 = sshll.u32 %s247_s17, 4  ;;  %p2066_p10 = scmp.ge.s32.totalorder %s2736_s27, 1  ;;  %s257_s18 = int_to_ptr.vmem [resolvable:$true] %s256_s18 }
  0x1d   : > { %s2873_s19 = scalar_lea.sflag [#allocation11], %s243_s13  ;;  %p2512_p11 = pneg %p2861_p9 }
  0x1e   : > { %s2523_s23 = scalar_lea.vmem %s257_s18, 2048  ;;  %s2738_s30 = smov [#allocation10]  }
  0x1f   : > { %p2524_p12 = scmp.ne.s32.totalorder %s257_s18, %s2523_s23  ;;  %s2528_s6 = sshll.u32 %s2738_s30, 4  ;;  %s2529_s6 = int_to_ptr.vmem [resolvable:$false] %s2528_s6 }
  0x20   : > { %s2530_s9 = scalar_lea.vmem %s2529_s6, 4096  ;;  %p2531_p1 = scmp.lt.s32.totalorder %s257_s18, %s2529_s6 }
  0x21   : > { %s255_s16 = scalar_lea.hbm %s4023_s2, %s2077_s10  ;;  %p2526_p13 = pnand %p2524_p12, %p2512_p11 }
  0x22   : > { %p2532_p3 = scmp.lt.s32.totalorder %s2530_s9, %s2523_s23 }
  0x23   : > { %p2527_p0 = pneg %p2526_p13 }
  0x24   : > { %p2533_p4 = por %p2532_p3, %p2531_p1 }
  0x26   : > { %p2534_p6 = pnand %p2533_p4, %p2527_p0 }
  0x28   : > { %2537 = shalt.err (!%p2534_p6)
}
  0x29   : > { %s4000_s14 = smov 128   ;;  %s2740_s13 = smov 8  }
  0x2a   : > { %2247 = dma.hbm_to_vmem [thread:$0]  (!%p2861_p9), %s255_s16, 2048, %s257_s18, %s2873_s19, %s4000_s14, %s4000_s14, %s2740_s13  }
  0x2b   : > { %p312_p12 = scmp.lt.s32.totalorder %s2736_s27, 3  ;;  %s4025_s1 = sld [smem:[#allocation36_spill]] }
  0x2c   : > { %s226_s30 = scalar_lea.vmem [#allocation7], %s2857_s11  ;;  %s4026_s2 = sand.u32 1, %s2724_s25  }
  0x2d   : > { %p2889_p13 = pnand %p2066_p10, %p312_p12  ;;  %s233_s6 = sshll.u32 %s226_s30, 4  ;;  %s234_s6 = int_to_ptr.vmem [resolvable:$true] %s233_s6 }
  0x2e   : > { %s223_s8 = scalar_lea.sflag [#allocation8], %s4026_s2  ;;  %s2551_s5 = scalar_lea.vmem %s234_s6, 2048 }
  0x2f   : > { %p2552_p0 = scmp.ne.s32.totalorder %s234_s6, %s2551_s5  ;;  %s2741_s16 = smov [#allocation7]  }
  0x30   : > { %s2556_s18 = sshll.u32 %s2741_s16, 4  ;;  %s2557_s18 = int_to_ptr.vmem [resolvable:$false] %s2556_s18 }
  0x31   : > { %s232_s23 = scalar_lea.hbm %s4025_s1, %s2077_s10  ;;  %p2554_p1 = pnand %p2552_p0, %p2512_p11 }
  0x32   : > { %s2558_s14 = scalar_lea.vmem %s2557_s18, 4096  ;;  %p2559_p10 = scmp.lt.s32.totalorder %s234_s6, %s2557_s18 }
  0x33   : > { %p2555_p3 = pneg %p2554_p1  ;;  %p2560_p4 = scmp.lt.s32.totalorder %s2558_s14, %s2551_s5 }
  0x35   : > { %p2561_p6 = por %p2560_p4, %p2559_p10 }
  0x37   : > { %p2562_p12 = pnand %p2561_p6, %p2555_p3 }
  0x39   : > { %2565 = shalt.err (!%p2562_p12)
}
  0x3a   : > { %s4027_s10 = smov 128   ;;  %s124_s2 = ssub.s32 1, %s2732_s26 }
  0x3b   : > { %2244 = dma.hbm_to_vmem [thread:$0]  (!%p2861_p9), %s232_s23, 2048, %s234_s6, %s223_s8, %s4027_s10, %s4027_s10, %s2740_s13  }
  0x3c   : > { %s125_s5 = ssub.s32 1, %s4082_s29  ;;  %s131_s11 = sadd.s32 1, %s2712_s22 }
  0x3d   : > { %s126_s12 = ssub.s32 %s124_s2, %s125_s5  ;;  %p138_p11 = scmp.ne.s32.totalorder %s2712_s22, %s2708_s21 }
  0x3e   : > { %p129_p0 = scmp.eq.s32.totalorder %s126_s12, 0  ;;  %p144_p1 = scmp.ne.s32.totalorder %s2708_s21, %s2704_s20 }
  0x3f   : > { %p140_p3 = por %p138_p11, %p81_p2  ;;  %s4002_s14 = sand.u32 1, %s2712_s22  }
  0x40   : > { %s2920_s15 = scalar_select %p129_p0, %s2712_s22, %s131_s11  }
  0x41   : > { %p2924_p10 = por %p144_p1, %p87_p5  ;;  %s2060_s8 = sshll.u32 %s4002_s14, 7 }
  0x42   : > { %s2930_s23 = sshll.u32 %s124_s2, 11  ;;  %s270_s16 = scalar_lea.vmem [#allocation12], %s2060_s8 }
  0x43   : > { %s279_s20 = scalar_lea.hbm %s3996_s3, %s2930_s23  ;;  %s280_s18 = sshll.u32 %s270_s16, 4  ;;  %s281_s18 = int_to_ptr.vmem [resolvable:$true] %s280_s18 }
  0x44   : > { %p2938_p2 = pnand %p2254_p8, %p140_p3  ;;  %s2579_s14 = scalar_lea.vmem %s281_s18, 2048 }
  0x45   : > { %p2580_p9 = scmp.ne.s32.totalorder %s281_s18, %s2579_s14  ;;  %s2742_s30 = smov [#allocation12]  }
  0x46   : > { %p2568_p5 = pneg %p2938_p2  ;;  %s2584_s6 = sshll.u32 %s2742_s30, 4  ;;  %s2585_s6 = int_to_ptr.vmem [resolvable:$false] %s2584_s6 }
  0x47   : > { %s2586_s16 = scalar_lea.vmem %s2585_s6, 4096  ;;  %p2587_p8 = scmp.lt.s32.totalorder %s281_s18, %s2585_s6 }
  0x48   : > { %p2582_p4 = pnand %p2580_p9, %p2568_p5  ;;  %p2588_p12 = scmp.lt.s32.totalorder %s2586_s16, %s2579_s14 }
  0x4a   : > { %p2583_p6 = pneg %p2582_p4  ;;  %p2589_p11 = por %p2588_p12, %p2587_p8 }
  0x4c   : > { %p2590_p0 = pnand %p2589_p11, %p2583_p6 }
  0x4e   : > { %2593 = shalt.err (!%p2590_p0)
}
  0x4f   : > { %2250 = dma.hbm_to_vmem [thread:$0]  (!%p2938_p2), %s279_s20, 2048, %s281_s18, %s2873_s19, %s4027_s10, %s4027_s10, %s2740_s13  }
  0x50   : > { %s294_s11 = scalar_lea.vmem [#allocation13], %s2060_s8  ;;  %s4030_s30 = sand.u32 1, %s2712_s22  }
  0x51   : > { %s304_s12 = sshll.u32 %s294_s11, 4  ;;  %s291_s2 = scalar_lea.sflag [#allocation14], %s4030_s30  ;;  %s305_s12 = int_to_ptr.vmem [resolvable:$true] %s304_s12 }
  0x52   : > { %s2607_s1 = scalar_lea.vmem %s305_s12, 2048  ;;  %s2743_s14 = smov [#allocation13]  }
  0x53   : > { %p2608_p1 = scmp.ne.s32.totalorder %s305_s12, %s2607_s1  ;;  %s2612_s6 = sshll.u32 %s2743_s14, 4  ;;  %s2613_s6 = int_to_ptr.vmem [resolvable:$false] %s2612_s6 }
  0x54   : > { %s2614_s16 = scalar_lea.vmem %s2613_s6, 4096  ;;  %p2615_p4 = scmp.lt.s32.totalorder %s305_s12, %s2613_s6 }
  0x55   : > { %p2610_p3 = pnand %p2608_p1, %p2568_p5  ;;  %p2616_p6 = scmp.lt.s32.totalorder %s2614_s16, %s2607_s1 }
  0x57   : > { %p2611_p9 = pneg %p2610_p3  ;;  %p2617_p8 = por %p2616_p6, %p2615_p4 }
  0x59   : > { %p2618_p12 = pnand %p2617_p8, %p2611_p9 }
  0x5b   : > { %2621 = shalt.err (!%p2618_p12)
}
  0x5c   : > { %s4031_s20 = scalar_lea.hbm %s3997_s4, %s2930_s23  ;;  %316 = sbr.rel (%p2889_p13) target bundleno = 1124 (0x464), region = 40 }
  0x5d   : > { %2253 = dma.hbm_to_vmem [thread:$0]  (!%p2938_p2), %s4031_s20, 2048, %s305_s12, %s291_s2, %s4027_s10, %s4027_s10, %s2740_s13  }
  0x61   : > { %s318_s1 = sand.u32 1, %s2720_s24  }
  0x62   : > { %s2067_s18 = sshll.u32 %s318_s1, 7  ;;  %s319_s11 = scalar_lea.sflag [#allocation8], %s318_s1 }
  0x63   : > { %s2975_s30 = scalar_lea.vmem [#allocation7], %s2067_s18 }
  0x64   : > { %2683 = dma.done.wait (%p2845_p7), %s319_s11, 2048  }
  0x65   : > { %2685 = vsyncadd (%p2845_p7), %s319_s11, 4294965248  ;;  %s327_s5 = sand.u32 1, %s2828_s28   ;;  %s2982_s13 = scalar_lea.vmem [#allocation10], %s2067_s18 }
  0x66   : > { %s328_s23 = scalar_lea.sflag [#allocation11], %s327_s5 }
  0x67   : > { %2687 = dma.done.wait (%p2845_p7), %s328_s23, 2048  }
  0x68   : > { %2689 = vsyncadd (%p2845_p7), %s328_s23, 4294965248  ;;  %s338_s9 = sand.u32 1, %s2708_s21  }
  0x69   : > { %s2069_s10 = sshll.u32 %s338_s9, 7 }
  0x6a   : > { %s2989_s2 = scalar_lea.vmem [#allocation12], %s2069_s10 }
  0x6b   : > { %2691 = dma.done.wait (%p2924_p10), %s328_s23, 2048  }
  0x6c   : > { %2693 = vsyncadd (%p2924_p10), %s328_s23, 4294965248  ;;  %s346_s12 = scalar_lea.sflag [#allocation14], %s338_s9  ;;  %s2995_s14 = scalar_lea.vmem [#allocation13], %s2069_s10 }
  0x6d   : > { %2695 = dma.done.wait (%p2924_p10), %s346_s12, 2048  }
  0x6e   : > { %2697 = vsyncadd (%p2924_p10), %s346_s12, 4294965248  ;;  %p391_p7 = scmp.eq.s32.totalorder %s2728_s0, 0 }
  0x6f   : > { %vm400_vm0 = vcmask (%p391_p7), 0   ;;  %v2744_v0 = vmov (%p391_p7), 0.0  }
  0x70   : > { %399 = sbr.rel (!%p391_p7) target bundleno = 117 (0x75), region = 60  ;;  %401 = vst.msk [vmem:[#allocation15] sm:$0x1] (%p391_p7), %vm400_vm0, %v2744_v0 }
  0x75 PF: > { %v479_v1 = vld [vmem:[%s2982_s13 + $0x78] sm:$0xff]  ;;  %v478_v2 = vld [vmem:[%s2982_s13 + $0x70] sm:$0xff]  ;;  %v2745_v3 = vmov 0.0   ;;  %vm2746_vm1 = vmmov 0   ;;  %v477_v4 = vld [vmem:[%s2982_s13 + $0x68] sm:$0xff]  ;;  %v2747_v57 = vmov 1.0  }
  0x76   : > { %2132 = vmatprep.subr.mxu0 %v479_v1  ;;  %2188 = vmatprep.subr.mxu1 %v2745_v3  ;;  %445 = vst [vmem:[#allocation5] sm:$0x1] %v2745_v3  ;;  %v1243_v5 = vld [vmem:[%s2995_s14 + $0x78] sm:$0xff]  ;;  %v3010_v6 = vld [vmem:[%s2975_s30] sm:$0xff]  ;;  %v1242_v8 = vld [vmem:[%s2995_s14 + $0x70] sm:$0xff]  ;;  %s446_s0 = sld [smem:[#allocation6]] }
  0x77   : > { %2133 = vmatpush3.xpose.msra.mxu0 %v479_v1  ;;  %2220 = vmatprep.mubr.msk.f32.mxu1 %vm2746_vm1, %v2745_v3  ;;  %v1323_v7 = vmul.f32 %v1243_v5, %v479_v1  ;;  %v476_v9 = vld [vmem:[%s2982_s13 + $0x60] sm:$0xff]  ;;  %v1322_v10 = vmul.f32 %v1242_v8, %v478_v2  ;;  %v1241_v11 = vld [vmem:[%s2995_s14 + $0x68] sm:$0xff]  ;;  %v475_v12 = vld [vmem:[%s2982_s13 + $0x58] sm:$0xff]  ;;  %v2748_v8 = vmov -1e+30   ;;  %vm407_vm6 = vcmask 7168  }
  0x78   : > { %2134 = vmatprep.subr.mxu0 %v478_v2  ;;  %2164 = vmatprep.mubr.f32.mxu0 %v3010_v6  ;;  %v1321_v13 = vmul.f32 %v1241_v11, %v477_v4  ;;  %v1240_v14 = vld [vmem:[%s2995_s14 + $0x60] sm:$0xff]  ;;  %v474_v15 = vld [vmem:[%s2982_s13 + $0x50] sm:$0xff]  ;;  %v1239_v17 = vld [vmem:[%s2995_s14 + $0x58] sm:$0xff]  ;;  %444 = vst [vmem:[#allocation4] sm:$0x1] %v2748_v8  ;;  %vm1881_vm7 = vcmask 1040384  }
  0x79   : > { %2189 = vmatpush3.xpose.msra.mxu1 %v1323_v7  ;;  %v1320_v16 = vmul.f32 %v1240_v14, %v476_v9  ;;  %v473_v18 = vld [vmem:[%s2982_s13 + $0x48] sm:$0xff]  ;;  %v1319_v19 = vmul.f32 %v1239_v17, %v475_v12  ;;  %v1238_v20 = vld [vmem:[%s2995_s14 + $0x50] sm:$0xff]  ;;  %v472_v21 = vld [vmem:[%s2982_s13 + $0x40] sm:$0xff]  ;;  %v643_v7 = vlaneseq  ;;  %409 = vst.msk [vmem:[#allocation2 + $0x8] sm:$0xff] %vm407_vm6, %v2748_v8  ;;  %vm1724_vm8 = vcmask 0   ;;  %s2750_s20 = smov [#allocation15]  }
  0x7a   : > { %2190 = vmatprep.subr.mxu1 %v2745_v3  ;;  %v1318_v22 = vmul.f32 %v1238_v20, %v474_v15  ;;  %v1237_v23 = vld [vmem:[%s2995_s14 + $0x48] sm:$0xff]  ;;  %v471_v24 = vld [vmem:[%s2982_s13 + $0x38] sm:$0xff]  ;;  %v1236_v26 = vld [vmem:[%s2995_s14 + $0x40] sm:$0xff]  ;;  %408 = vst.msk [vmem:[#allocation2] sm:$0xff] %vm407_vm6, %v2748_v8  ;;  %s1904_s1 = sshll.u32 %s2750_s20, 4  ;;  %p2255_p13 = scmp.eq.s32.totalorder %s2828_s28, 1  ;;  %s1905_s1 = int_to_ptr.vmem [resolvable:$true] %s1904_s1 }
  0x7b   : > { %2135 = vmatpush3.xpose.msra.mxu0 %v478_v2  ;;  %v1317_v25 = vmul.f32 %v1237_v23, %v473_v18  ;;  %v470_v27 = vld [vmem:[%s2982_s13 + $0x30] sm:$0xff]  ;;  %v1316_v28 = vmul.f32 %v1236_v26, %v472_v21  ;;  %v1235_v29 = vld [vmem:[%s2995_s14 + $0x38] sm:$0xff]  ;;  %v469_v30 = vld [vmem:[%s2982_s13 + $0x28] sm:$0xff]  ;;  %410 = vst.msk [vmem:[#allocation2 + $0x10] sm:$0xff] %vm407_vm6, %v2748_v8  ;;  %s2622_s18 = scalar_lea.vmem %s1905_s1, 16  ;;  %s2628_s11 = scalar_lea.vmem %s1905_s1, 32 }
  0x7c   : > { %2136 = vmatprep.subr.mxu0 %v477_v4  ;;  %v1315_v31 = vmul.f32 %v1235_v29, %v471_v24  ;;  %v1234_v32 = vld [vmem:[%s2995_s14 + $0x30] sm:$0xff]  ;;  %v468_v33 = vld [vmem:[%s2982_s13 + $0x20] sm:$0xff]  ;;  %v1233_v35 = vld [vmem:[%s2995_s14 + $0x28] sm:$0xff]  ;;  %v3126_v11 = vstv %s446_s0  ;;  %411 = vst.msk [vmem:[#allocation2 + $0x18] sm:$0xff] %vm407_vm6, %v2748_v8  ;;  %p2623_p10 = scmp.ne.s32.totalorder %s1905_s1, %s2622_s18  ;;  %p2629_p11 = scmp.lt.s32.totalorder %s1905_s1, %s1905_s1 }
  0x7d   : > { %2191 = vmatpush3.xpose.msra.mxu1 %v1322_v10  ;;  %v1314_v34 = vmul.f32 %v1234_v32, %v470_v27  ;;  %v467_v36 = vld [vmem:[%s2982_s13 + $0x18] sm:$0xff]  ;;  %v1313_v37 = vmul.f32 %v1233_v35, %v469_v30  ;;  %v1232_v38 = vld [vmem:[%s2995_s14 + $0x20] sm:$0xff]  ;;  %v466_v39 = vld [vmem:[%s2982_s13 + $0x10] sm:$0xff]  ;;  %v3121_v10 = vand.u32 127, %v643_v7  ;;  %412 = vst.msk [vmem:[#allocation2 + $0x20] sm:$0xff] %vm407_vm6, %v2748_v8  ;;  %p2630_p0 = scmp.lt.s32.totalorder %s2628_s11, %s2622_s18 }
  0x7e   : > { %2192 = vmatprep.subr.mxu1 %v2745_v3  ;;  %v1312_v40 = vmul.f32 %v1232_v38, %v468_v33  ;;  %v1231_v41 = vld [vmem:[%s2995_s14 + $0x18] sm:$0xff]  ;;  %v465_v42 = vld [vmem:[%s2982_s13 + $0x8] sm:$0xff]  ;;  %v1230_v44 = vld [vmem:[%s2995_s14 + $0x10] sm:$0xff]  ;;  %413 = vst.msk [vmem:[#allocation2 + $0x28] sm:$0xff] %vm407_vm6, %v2748_v8  ;;  %p2624_p2 = pnand %p2623_p10, %p2255_p13 }
  0x7f   : > { %2137 = vmatpush3.xpose.msra.mxu0 %v477_v4  ;;  %v1311_v43 = vmul.f32 %v1231_v41, %v467_v36  ;;  %v464_v45 = vld [vmem:[%s2982_s13] sm:$0xff]  ;;  %v1310_v46 = vmul.f32 %v1230_v44, %v466_v39  ;;  %v1229_v47 = vld [vmem:[%s2995_s14 + $0x8] sm:$0xff]  ;;  %v3059_v51 = vld [vmem:[%s2975_s30 + $0x10] sm:$0xff]  ;;  %vm681_vm3 = vcmp.lt.s32.totalorder %v3121_v10, 4  ;;  %414 = vst.msk [vmem:[#allocation2 + $0x30] sm:$0xff] %vm407_vm6, %v2748_v8  ;;  %p2631_p1 = por %p2630_p0, %p2629_p11 }
  0x80   : > { %2138 = vmatprep.subr.mxu0 %v476_v9  ;;  %v1309_v48 = vmul.f32 %v1229_v47, %v465_v42  ;;  %v1228_v49 = vld [vmem:[%s2995_s14] sm:$0xff]  ;;  %v3056_v50 = vld [vmem:[%s2975_s30 + $0x8] sm:$0xff]  ;;  %v3065_v53 = vld [vmem:[%s2975_s30 + $0x18] sm:$0xff]  ;;  %415 = vst.msk [vmem:[#allocation2 + $0x38] sm:$0xff] %vm407_vm6, %v2748_v8  ;;  %p2625_p5 = pneg %p2624_p2 }
  0x81   : > { %2193 = vmatpush3.xpose.msra.mxu1 %v1321_v13  ;;  %v1308_v52 = vmul.f32 %v1228_v49, %v464_v45  ;;  %v3068_v54 = vld [vmem:[%s2975_s30 + $0x20] sm:$0xff]  ;;  %v3073_v55 = vld [vmem:[%s2975_s30 + $0x28] sm:$0xff]  ;;  %v3076_v56 = vld [vmem:[%s2975_s30 + $0x30] sm:$0xff]  ;;  %416 = vst.msk [vmem:[#allocation2 + $0x40] sm:$0xff] %vm407_vm6, %v2748_v8 }
  0x82   : > { %2194 = vmatprep.subr.mxu1 %v2745_v3  ;;  %v3081_v58 = vld [vmem:[%s2975_s30 + $0x38] sm:$0xff]  ;;  %v3084_v59 = vld [vmem:[%s2975_s30 + $0x40] sm:$0xff]  ;;  %v3089_v60 = vld [vmem:[%s2975_s30 + $0x48] sm:$0xff]  ;;  %417 = vst.msk [vmem:[#allocation2 + $0x48] sm:$0xff] %vm407_vm6, %v2748_v8  ;;  %p2632_p3 = pnand %p2631_p1, %p2625_p5 }
  0x83   : > { %2139 = vmatpush3.xpose.msra.mxu0 %v476_v9  ;;  %v3092_v61 = vld [vmem:[%s2975_s30 + $0x50] sm:$0xff]  ;;  %v3097_v62 = vld [vmem:[%s2975_s30 + $0x58] sm:$0xff]  ;;  %v3100_v63 = vld [vmem:[%s2975_s30 + $0x60] sm:$0xff]  ;;  %v3119_v9 = vshrl.u32 %v643_v7, 7  ;;  %418 = vst.msk [vmem:[#allocation2 + $0x50] sm:$0xff] %vm407_vm6, %v2748_v8 }
  0x84   : > { %2140 = vmatprep.subr.mxu0 %v475_v12  ;;  %4032 = vst [vmem:[#allocation22_spill] sm:$0xff] %v3092_v61  ;;  %4033 = vst [vmem:[#allocation23_spill] sm:$0xff] %v3100_v63  ;;  %v3105_v0 = vld [vmem:[%s2975_s30 + $0x68] sm:$0xff]  ;;  %v3108_v1 = vld [vmem:[%s2975_s30 + $0x70] sm:$0xff] }
  0x85   : > { %2195 = vmatpush3.xpose.msra.mxu1 %v1320_v16  ;;  %4034 = vst [vmem:[#allocation24_spill] sm:$0xff] %v3105_v0  ;;  %4035 = vst [vmem:[#allocation25_spill] sm:$0xff] %v3108_v1  ;;  %v3113_v2 = vld [vmem:[%s2975_s30 + $0x78] sm:$0xff]  ;;  %v1212_v4 = vld [vmem:[%s2989_s2] sm:$0xff]  ;;  %vm1616_vm2 = vcmp.eq.s32.totalorder %v3119_v9, %v3121_v10  ;;  %vm683_vm4 = vcmp.lt.s32.totalorder %v3119_v9, 4 }
  0x86   : > { %2196 = vmatprep.subr.mxu1 %v2745_v3  ;;  %4036 = vst [vmem:[#allocation26_spill] sm:$0xff] %v3113_v2  ;;  %v1244_v5 = vmul.f32 %v1212_v4, %v3010_v6  ;;  %vm3139_vm5 = vmand %vm1616_vm2, %vm683_vm4 }
  0x87   : > { %2141 = vmatpush3.xpose.msra.mxu0 %v475_v12  ;;  %v3132_v12 = vsel %vm681_vm3, 0.0, %v2748_v8  ;;  %419 = vst.msk [vmem:[#allocation2 + $0x58] sm:$0xff] %vm407_vm6, %v2748_v8  ;;  %420 = vst.msk [vmem:[#allocation2 + $0x60] sm:$0xff] %vm407_vm6, %v2748_v8 }
  0x88   : > { %2142 = vmatprep.subr.mxu0 %v474_v15  ;;  %1260 = vadd.xlane.f32.xlu1 %v1244_v5  ;;  %421 = vst.msk [vmem:[#allocation2 + $0x68] sm:$0xff] %vm407_vm6, %v2748_v8  ;;  %422 = vst.msk [vmem:[#allocation2 + $0x70] sm:$0xff] %vm407_vm6, %v2748_v8 }
  0x89   : > { %2197 = vmatpush3.xpose.msra.mxu1 %v1319_v19  ;;  %423 = vst.msk [vmem:[#allocation2 + $0x78] sm:$0xff] %vm407_vm6, %v2748_v8  ;;  %425 = vst.msk [vmem:[#allocation3] sm:$0xff] %vm407_vm6, %v2745_v3 }
  0x8a   : > { %2198 = vmatprep.subr.mxu1 %v2745_v3  ;;  %426 = vst.msk [vmem:[#allocation3 + $0x8] sm:$0xff] %vm407_vm6, %v2745_v3  ;;  %427 = vst.msk [vmem:[#allocation3 + $0x10] sm:$0xff] %vm407_vm6, %v2745_v3 }
  0x8b   : > { %2143 = vmatpush3.xpose.msra.mxu0 %v474_v15  ;;  %428 = vst.msk [vmem:[#allocation3 + $0x18] sm:$0xff] %vm407_vm6, %v2745_v3  ;;  %429 = vst.msk [vmem:[#allocation3 + $0x20] sm:$0xff] %vm407_vm6, %v2745_v3 }
  0x8c   : > { %2144 = vmatprep.subr.mxu0 %v473_v18  ;;  %430 = vst.msk [vmem:[#allocation3 + $0x28] sm:$0xff] %vm407_vm6, %v2745_v3  ;;  %431 = vst.msk [vmem:[#allocation3 + $0x30] sm:$0xff] %vm407_vm6, %v2745_v3 }
  0x8d   : > { %2199 = vmatpush3.xpose.msra.mxu1 %v1318_v22  ;;  %432 = vst.msk [vmem:[#allocation3 + $0x38] sm:$0xff] %vm407_vm6, %v2745_v3  ;;  %433 = vst.msk [vmem:[#allocation3 + $0x40] sm:$0xff] %vm407_vm6, %v2745_v3 }
  0x8e   : > { %2200 = vmatprep.subr.mxu1 %v2745_v3  ;;  %434 = vst.msk [vmem:[#allocation3 + $0x48] sm:$0xff] %vm407_vm6, %v2745_v3  ;;  %435 = vst.msk [vmem:[#allocation3 + $0x50] sm:$0xff] %vm407_vm6, %v2745_v3 }
  0x8f   : > { %2145 = vmatpush3.xpose.msra.mxu0 %v473_v18  ;;  %436 = vst.msk [vmem:[#allocation3 + $0x58] sm:$0xff] %vm407_vm6, %v2745_v3  ;;  %437 = vst.msk [vmem:[#allocation3 + $0x60] sm:$0xff] %vm407_vm6, %v2745_v3 }
  0x90   : > { %2146 = vmatprep.subr.mxu0 %v472_v21  ;;  %438 = vst.msk [vmem:[#allocation3 + $0x68] sm:$0xff] %vm407_vm6, %v2745_v3  ;;  %439 = vst.msk [vmem:[#allocation3 + $0x70] sm:$0xff] %vm407_vm6, %v2745_v3 }
  0x91   : > { %2201 = vmatpush3.xpose.msra.mxu1 %v1317_v25  ;;  %440 = vst.msk [vmem:[#allocation3 + $0x78] sm:$0xff] %vm407_vm6, %v2745_v3 }
  0x92   : > { %2202 = vmatprep.subr.mxu1 %v2745_v3 }
  0x93   : > { %2147 = vmatpush3.xpose.msra.mxu0 %v472_v21 }
  0x94   : > { %2148 = vmatprep.subr.mxu0 %v471_v24 }
  0x95   : > { %2203 = vmatpush3.xpose.msra.mxu1 %v1316_v28 }
  0x96   : > { %2204 = vmatprep.subr.mxu1 %v2745_v3 }
  0x97   : > { %2149 = vmatpush3.xpose.msra.mxu0 %v471_v24 }
  0x98   : > { %2150 = vmatprep.subr.mxu0 %v470_v27 }
  0x99   : > { %2205 = vmatpush3.xpose.msra.mxu1 %v1315_v31 }
  0x9a   : > { %2206 = vmatprep.subr.mxu1 %v2745_v3 }
  0x9b   : > { %2151 = vmatpush3.xpose.msra.mxu0 %v470_v27 }
  0x9c   : > { %2152 = vmatprep.subr.mxu0 %v469_v30 }
  0x9d   : > { %2207 = vmatpush3.xpose.msra.mxu1 %v1314_v34 }
  0x9e   : > { %2208 = vmatprep.subr.mxu1 %v2745_v3 }
  0x9f   : > { %2153 = vmatpush3.xpose.msra.mxu0 %v469_v30 }
  0xa0   : > { %2154 = vmatprep.subr.mxu0 %v468_v33 }
  0xa1   : > { %2209 = vmatpush3.xpose.msra.mxu1 %v1313_v37 }
  0xa2   : > { %2210 = vmatprep.subr.mxu1 %v2745_v3 }
  0xa3   : > { %2155 = vmatpush3.xpose.msra.mxu0 %v468_v33 }
  0xa4   : > { %2156 = vmatprep.subr.mxu0 %v467_v36 }
  0xa5   : > { %2211 = vmatpush3.xpose.msra.mxu1 %v1312_v40 }
  0xa6   : > { %2212 = vmatprep.subr.mxu1 %v2745_v3 }
  0xa7   : > { %2157 = vmatpush3.xpose.msra.mxu0 %v467_v36 }
  0xa8   : > { %2158 = vmatprep.subr.mxu0 %v466_v39 }
  0xa9   : > { %2213 = vmatpush3.xpose.msra.mxu1 %v1311_v43  ;;  %v2749_v43 = vmov 0  }
  0xaa   : > { %2214 = vmatprep.subr.mxu1 %v2745_v3  ;;  %2338 = vset.pattern.permute.xlu0 %v2749_v43 }
  0xab   : > { %2159 = vmatpush3.xpose.msra.mxu0 %v466_v39  ;;  %2339 = vset.pattern.permute.xlu1 %v2749_v43 }
  0xac   : > { %2160 = vmatprep.subr.mxu0 %v465_v42 }
  0xad   : > { %2215 = vmatpush3.xpose.msra.mxu1 %v1310_v46  ;;  %v699_v46 = vsel %vm683_vm4, 0.0, %v2748_v8 }
  0xae   : > { %2216 = vmatprep.subr.mxu1 %v2745_v3 }
  0xaf   : > { %2161 = vmatpush3.xpose.msra.mxu0 %v465_v42 }
  0xb0   : > { %2162 = vmatprep.subr.mxu0 %v464_v45 }
  0xb1   : > { %2217 = vmatpush3.xpose.msra.mxu1 %v1309_v48 }
  0xb2   : > { %2218 = vmatprep.subr.mxu1 %v2745_v3 }
  0xb3   : > { %2163 = vmatpush3.xpose.msra.mxu0 %v464_v45 }
  0xb5   : > { %2219 = vmatpush3.xpose.msra.mxu1 %v1308_v52 }
  0xb6   : > { %2165 = vmatmul.mubr.f32.vlgmr.msra.gmra.mxu0 %v3056_v50 }
  0xb7   : > { %2167 = vmatprep.mubr.f32.mxu0 %v3059_v51 }
  0xb8   : > { %2221 = vmatmul.mubr.f32.vlgmr.msra.gmra.mxu1 %v2747_v57 }
  0xba   : > { %2168 = vmatmul.mubr.f32.gmra.mxu0 %v3065_v53 }
  0xbb   : > { %2170 = vmatprep.mubr.f32.mxu0 %v3068_v54 }
  0xbe   : > { %2171 = vmatmul.mubr.f32.gmra.mxu0 %v3073_v55 }
  0xbf   : > { %2173 = vmatprep.mubr.f32.mxu0 %v3076_v56 }
  0xc2   : > { %2174 = vmatmul.mubr.f32.gmra.mxu0 %v3081_v58 }
  0xc3   : > { %2176 = vmatprep.mubr.f32.mxu0 %v3084_v59 }
  0xc6   : > { %2177 = vmatmul.mubr.f32.gmra.mxu0 %v3089_v60 }
  0xc7   : > { %2179 = vmatprep.mubr.f32.mxu0 %v3092_v61  ;;  %v1133_v61 = vsub.s32 0, %v3119_v9 }
  0xca   : > { %2180 = vmatmul.mubr.f32.gmra.mxu0 %v3097_v62 }
  0xcb   : > { %2182 = vmatprep.mubr.f32.mxu0 %v3100_v63 }
  0xce   : > { %2183 = vmatmul.mubr.f32.gmra.mxu0 %v3105_v0 }
  0xcf   : > { %2185 = vmatprep.mubr.f32.mxu0 %v3108_v1 }
  0xd2   : > { %2186 = vmatmul.mubr.f32.gmra.mxu0 %v3113_v2 }
 0x176   : > { %v2166_v6 = vpop.f32.mrf.mxu0 }
 0x177   : > { %v3135_v13 = vmul.f32 %v2166_v6, %v3126_v11 }
 0x178   : > { %v546_v14 = vpop.f32.mrf.mxu0  ;;  %v3158_v22 = vpop.f32.mrf.mxu1 }
 0x179   : > { %v3144_v16 = vmul.f32 %v3126_v11, %v546_v14  ;;  %v3148_v17 = vadd.f32 %v3132_v12, %v3135_v13 }
 0x17a   : > { %v2169_v18 = vpop.f32.mrf.mxu0  ;;  %v2222_v25 = vpop.f32.mrf.mxu1 }
 0x17b   : > { %783 = vmax.xlane.f32.xlu1 %v3148_v17  ;;  %v3153_v19 = vadd.f32 %v3132_v12, %v3144_v16  ;;  %v629_v26 = vmul.f32 %v2169_v18, %v3126_v11 }
 0x17c   : > { %v556_v21 = vpop.f32.mrf.mxu0 }
 0x17d   : > { %v3161_v23 = vmul.f32 %v3126_v11, %v556_v21  ;;  %781 = vmax.xlane.f32.xlu0 %v3153_v19  ;;  %v3235_v29 = vadd.f32 %v3132_v12, %v629_v26  ;;  %v3249_v40 = vadd.f32 -1e+30, %v629_v26  ;;  %v731_v21 = vadd.f32 %v699_v46, %v3144_v16 }
 0x17e   : > { %v2172_v24 = vpop.f32.mrf.mxu0 }
 0x17f   : > { %v3167_v27 = vadd.f32 %v3132_v12, %v3161_v23  ;;  %v631_v35 = vmul.f32 %v2172_v24, %v3126_v11  ;;  %v3261_v47 = vadd.f32 -1e+30, %v3161_v23 }
 0x180   : > { %v566_v28 = vpop.f32.mrf.mxu0 }
 0x181   : > { %785 = vmax.xlane.f32.xlu1 %v3167_v27  ;;  %v630_v31 = vmul.f32 %v3126_v11, %v566_v28  ;;  %v3247_v38 = vadd.f32 %v3132_v12, %v631_v35  ;;  %v3282_v6 = vadd.f32 -1e+30, %v631_v35 }
 0x182   : > { %v2175_v30 = vpop.f32.mrf.mxu0 }
 0x183   : > { %v3240_v33 = vadd.f32 %v3132_v12, %v630_v31  ;;  %v633_v36 = vmul.f32 %v2175_v30, %v3126_v11  ;;  %4039 = vst [vmem:[#allocation27_spill] sm:$0xff] %v3247_v38  ;;  %v3272_v57 = vadd.f32 -1e+30, %v630_v31  ;;  %v732_v30 = vadd.f32 -1e+30, %v3135_v13 }
 0x184   : > { %v576_v32 = vpop.f32.mrf.mxu0 }
 0x185   : > { %787 = vmax.xlane.f32.xlu1 %v3235_v29  ;;  %v632_v37 = vmul.f32 %v3126_v11, %v576_v32  ;;  %v3251_v41 = vadd.f32 -1e+30, %v633_v36  ;;  %v3288_v23 = vadd.f32 %v3132_v12, %v633_v36  ;;  %v1104_v32 = vmax.f32 %v731_v21, %v3272_v57 }
 0x186   : > { %v2178_v34 = vpop.f32.mrf.mxu0 }
 0x187   : > { %v3263_v48 = vadd.f32 -1e+30, %v632_v37  ;;  %v3270_v52 = vadd.f32 %v3132_v12, %v632_v37  ;;  %v1107_v5 = vmax.f32 %v3249_v40, %v3251_v41  ;;  %v3277_v7 = vmul.f32 %v2178_v34, %v3126_v11  ;;  %4041 = vst [vmem:[#allocation29_spill] sm:$0xff] %v3288_v23 }
 0x188   : > { %v586_v3 = vpop.f32.mrf.mxu0  ;;  %v1105_v37 = vmax.f32 %v732_v30, %v3282_v6 }
 0x189   : > { %789 = vmax.xlane.f32.xlu1 %v3240_v33  ;;  %v634_v44 = vmul.f32 %v3126_v11, %v586_v3  ;;  %4040 = vst [vmem:[#allocation28_spill] sm:$0xff] %v3270_v52  ;;  %v1106_v24 = vmax.f32 %v3261_v47, %v3263_v48  ;;  %v3305_v34 = vadd.f32 -1e+30, %v3277_v7 }
 0x18a   : > { %v2181_v39 = vpop.f32.mrf.mxu0 }
 0x18b   : > { %v3254_v42 = vmul.f32 %v2181_v39, %v3126_v11  ;;  %v3284_v14 = vadd.f32 -1e+30, %v634_v44  ;;  %v3317_v13 = vadd.f32 %v3132_v12, %v634_v44 }
 0x18c   : > { %v596_v45 = vpop.f32.mrf.mxu0 }
 0x18d   : > { %v3266_v49 = vmul.f32 %v3126_v11, %v596_v45  ;;  %791 = vmax.xlane.f32.xlu1 %v3247_v38  ;;  %v3280_v8 = vadd.f32 -1e+30, %v3254_v42  ;;  %v1108_v43 = vmax.f32 %v1104_v32, %v3284_v14 }
 0x18e   : > { %v2184_v4 = vpop.f32.mrf.mxu0 }
 0x18f   : > { %v3293_v25 = vadd.f32 -1e+30, %v3266_v49  ;;  %v3296_v26 = vmul.f32 %v2184_v4, %v3126_v11  ;;  %v1111_v35 = vmax.f32 %v1107_v5, %v3280_v8 }
 0x190   : > { %v606_v18 = vpop.f32.mrf.mxu0 }
 0x191   : > { %v3299_v28 = vmul.f32 %v3126_v11, %v606_v18  ;;  %793 = vmax.xlane.f32.xlu1 %v3270_v52  ;;  %v1110_v45 = vmax.f32 %v1106_v24, %v3293_v25  ;;  %v3321_v46 = vadd.f32 -1e+30, %v3296_v26  ;;  %v1109_v18 = vmax.f32 %v1105_v37, %v3305_v34 }
 0x192   : > { %v2187_v31 = vpop.f32.mrf.mxu0 }
 0x193   : > { %v3309_v36 = vadd.f32 -1e+30, %v3299_v28  ;;  %v3312_v3 = vmul.f32 %v2187_v31, %v3126_v11  ;;  %v1113_v32 = vmax.f32 %v1109_v18, %v3321_v46 }
 0x194   : > { %v616_v39 = vpop.f32.mrf.mxu0 }
 0x195   : > { %v3324_v4 = vadd.f32 -1e+30, %v3312_v3  ;;  %v3327_v5 = vmul.f32 %v3126_v11, %v616_v39  ;;  %795 = vmax.xlane.f32.xlu1 %v3288_v23  ;;  %v1112_v24 = vmax.f32 %v1108_v43, %v3309_v36 }
 0x197   : > { %v1115_v31 = vmax.f32 %v1111_v35, %v3324_v4  ;;  %v3333_v44 = vadd.f32 -1e+30, %v3327_v5  ;;  %v1116_v39 = vmax.f32 %v1112_v24, %v1113_v32  ;;  %v3339_v35 = vld [vmem:[#allocation4] sm:$0x1] }
 0x199   : > { %v1114_v20 = vmax.f32 %v1110_v45, %v3333_v44  ;;  %797 = vmax.xlane.f32.xlu1 %v3317_v13 }
 0x19b   : > { %v1117_v1 = vmax.f32 %v1114_v20, %v1115_v31 }
 0x19d   : > { %v1118_v2 = vmax.f32 %v1116_v39, %v1117_v1 }
 0x19f   : > { %v1119_v63 = vrot.slane %v1118_v2, 4 }
 0x1a1   : > { %v1120_v23 = vmax.f32 %v1118_v2, %v1119_v63 }
 0x1a3   : > { %v1121_v0 = vrot.slane %v1120_v23, 2 }
 0x1a5   : > { %v1122_v37 = vmax.f32 %v1120_v23, %v1121_v0 }
 0x1a7   : > { %v1123_v38 = vrot.slane %v1122_v37, 1 }
 0x1a9   : > { %v1124_v52 = vmax.f32 %v1122_v37, %v1123_v38 }
 0x1ab   : > { %v3343_v43 = vmax.f32 %v3339_v35, %v1124_v52  ;;  %v3357_v52 = vmul.f32 %v3158_v22, %v3126_v11 }
 0x1ad   : > { %v3346_v45 = vrot.slane %v3343_v43, %v1133_v61  ;;  %1206 = vst [vmem:[#allocation4] sm:$0x1] %v3343_v43 }
 0x1af   : > { %v1136_v1 = vsub.f32 %v731_v21, %v3346_v45  ;;  %v1137_v63 = vsub.f32 %v732_v30, %v3346_v45  ;;  %v1138_v0 = vsub.f32 %v3261_v47, %v3346_v45  ;;  %v1139_v2 = vsub.f32 %v3249_v40, %v3346_v45 }
 0x1b0   : > { %v1140_v23 = vsub.f32 %v3272_v57, %v3346_v45  ;;  %v1141_v47 = vsub.f32 %v3282_v6, %v3346_v45  ;;  %v1142_v22 = vsub.f32 %v3263_v48, %v3346_v45  ;;  %v1143_v57 = vsub.f32 %v3251_v41, %v3346_v45 }
 0x1b1   : > { %v1152_v20 = vmul.f32 1.442695, %v1136_v1  ;;  %v1154_v38 = vmul.f32 1.442695, %v1137_v63  ;;  %v1156_v61 = vmul.f32 1.442695, %v1138_v0  ;;  %v1144_v24 = vsub.f32 %v3284_v14, %v3346_v45 }
 0x1b2   : > { %v1158_v21 = vmul.f32 1.442695, %v1139_v2  ;;  %v1160_v18 = vmul.f32 1.442695, %v1140_v23  ;;  %v1162_v31 = vmul.f32 1.442695, %v1141_v47  ;;  %v1145_v32 = vsub.f32 %v3305_v34, %v3346_v45 }
 0x1b3   : > { %2340 = vpow2.f32 %v1152_v20  ;;  %v1164_v6 = vmul.f32 1.442695, %v1142_v22  ;;  %v1166_v39 = vmul.f32 1.442695, %v1143_v57  ;;  %v1146_v48 = vsub.f32 %v3293_v25, %v3346_v45 }
 0x1b4   : > { %2342 = vpow2.f32 %v1154_v38  ;;  %v3361_v30 = vld [vmem:[#allocation4] sm:$0x1]  ;;  %v1168_v37 = vmul.f32 1.442695, %v1144_v24  ;;  %v1147_v41 = vsub.f32 %v3280_v8, %v3346_v45  ;;  %v1170_v63 = vmul.f32 1.442695, %v1145_v32 }
 0x1b5   : > { %v3367_v40 = vmax.f32 %v3361_v30, %v3357_v52  ;;  %2344 = vpow2.f32 %v1156_v61  ;;  %v1148_v2 = vsub.f32 %v3309_v36, %v3346_v45  ;;  %v1172_v34 = vmul.f32 1.442695, %v1146_v48 }
 0x1b6   : > { %2346 = vpow2.f32 %v1158_v21  ;;  %v1149_v25 = vsub.f32 %v3321_v46, %v3346_v45  ;;  %v1174_v61 = vmul.f32 1.442695, %v1147_v41  ;;  %v1150_v8 = vsub.f32 %v3333_v44, %v3346_v45 }
 0x1b7   : > { %1614 = vst [vmem:[#allocation4] sm:$0x1] %v3367_v40  ;;  %2348 = vpow2.f32 %v1160_v18  ;;  %v1176_v47 = vmul.f32 1.442695, %v1148_v2  ;;  %v1151_v36 = vsub.f32 %v3324_v4, %v3346_v45  ;;  %v1126_v4 = vsub.f32 %v3339_v35, %v3343_v43 }
 0x1b8   : > { %2350 = vpow2.f32 %v1162_v31  ;;  %v1178_v18 = vmul.f32 1.442695, %v1149_v25  ;;  %v1180_v24 = vmul.f32 1.442695, %v1150_v8  ;;  %v1610_v35 = vsub.f32 %v3357_v52, %v3367_v40  ;;  %v1261_v52 = vpop.xlane.xlu1 %1260 }
 0x1b9   : > { %2352 = vpow2.f32 %v1164_v6  ;;  %v1182_v32 = vmul.f32 1.442695, %v1151_v36  ;;  %v1127_v2 = vmul.f32 1.442695, %v1126_v4 }
 0x1ba   : > { %2354 = vpow2.f32 %v1166_v39 }
 0x1bb   : > { %2356 = vpow2.f32 %v1168_v37 }
 0x1bc   : > { %2358 = vpow2.f32 %v1170_v63 }
 0x1bd   : > { %2360 = vpow2.f32 %v1172_v34 }
 0x1be   : > { %2362 = vpow2.f32 %v1174_v61 }
 0x1bf   : > { %2364 = vpow2.f32 %v1176_v47 }
 0x1c0   : > { %v2341_v1 = vpop.eup %2340  ;;  %2366 = vpow2.f32 %v1178_v18 }
 0x1c1   : > { %v2343_v0 = vpop.eup %2342  ;;  %2368 = vpow2.f32 %v1180_v24 }
 0x1c2   : > { %v1184_v14 = vadd.f32 %v2343_v0, %v2341_v1  ;;  %v2345_v20 = vpop.eup %2344  ;;  %2370 = vpow2.f32 %v1182_v32 }
 0x1c3   : > { %v2347_v23 = vpop.eup %2346  ;;  %2372 = vpow2.f32 %v1127_v2 }
 0x1c4   : > { %v1185_v38 = vadd.f32 %v2345_v20, %v1184_v14  ;;  %v2349_v22 = vpop.eup %2348 }
 0x1c5   : > { %v2351_v31 = vpop.eup %2350 }
 0x1c6   : > { %v1186_v21 = vadd.f32 %v2347_v23, %v1185_v38  ;;  %v2353_v6 = vpop.eup %2352 }
 0x1c7   : > { %v2355_v48 = vpop.eup %2354 }
 0x1c8   : > { %v1187_v57 = vadd.f32 %v2349_v22, %v1186_v21  ;;  %v2357_v37 = vpop.eup %2356  ;;  %v1606_v22 = vsub.f32 %v3361_v30, %v3367_v40  ;;  %v3396_v40 = vld [vmem:[#allocation2 + $0x8] sm:$0xff] }
 0x1c9   : > { %v2359_v41 = vpop.eup %2358 }
 0x1ca   : > { %v1188_v46 = vadd.f32 %v2351_v31, %v1187_v57  ;;  %v2361_v63 = vpop.eup %2360  ;;  %v1607_v18 = vmul.f32 1.442695, %v1606_v22  ;;  %v1611_v31 = vmul.f32 1.442695, %v1610_v35 }
 0x1cb   : > { %v2363_v14 = vpop.eup %2362 }
 0x1cc   : > { %v1189_v39 = vadd.f32 %v2353_v6, %v1188_v46  ;;  %v2365_v20 = vpop.eup %2364  ;;  %v1103_v6 = vld [vmem:[#allocation5] sm:$0x1]  ;;  %2374 = vpow2.f32 %v1607_v18 }
 0x1cd   : > { %v2367_v25 = vpop.eup %2366  ;;  %2376 = vpow2.f32 %v1611_v31 }
 0x1ce   : > { %v1190_v44 = vadd.f32 %v2355_v48, %v1189_v39  ;;  %v2369_v23 = vpop.eup %2368 }
 0x1cf   : > { %v2371_v8 = vpop.eup %2370 }
 0x1d0   : > { %v1191_v1 = vadd.f32 %v2357_v37, %v1190_v44  ;;  %v2373_v46 = vpop.eup %2372 }
 0x1d1   : > { %v1129_v39 = vmul.f32 %v2373_v46, %v1103_v6 }
 0x1d2   : > { %v1192_v45 = vadd.f32 %v2359_v41, %v1191_v1 }
 0x1d4   : > { %v1193_v0 = vadd.f32 %v2361_v63, %v1192_v45  ;;  %v3398_v63 = vld [vmem:[#allocation2] sm:$0xff] }
 0x1d6   : > { %v1194_v34 = vadd.f32 %v2363_v14, %v1193_v0 }
 0x1d8   : > { %v1195_v38 = vadd.f32 %v2365_v20, %v1194_v34  ;;  %v3408_v34 = vld [vmem:[#allocation2 + $0x10] sm:$0xff] }
 0x1d9   : > { %v2375_v37 = vpop.eup %2374 }
 0x1da   : > { %v1196_v61 = vadd.f32 %v2367_v25, %v1195_v38  ;;  %v2377_v41 = vpop.eup %2376 }
 0x1dc   : > { %v1197_v21 = vadd.f32 %v2369_v23, %v1196_v61  ;;  %v3418_v61 = vld [vmem:[#allocation2 + $0x18] sm:$0xff]  ;;  %v3421_v23 = vmul.f32 %v1261_v52, %v3126_v11  ;;  %v3470_v52 = vadd.f32 %v3132_v12, %v3254_v42  ;;  %v3482_v42 = vadd.f32 %v3132_v12, %v3277_v7 }
 0x1dd   : > { %v3502_v7 = vadd.f32 %v3132_v12, %v3327_v5 }
 0x1de   : > { %v1198_v47 = vadd.f32 %v2371_v8, %v1197_v21 }
 0x1e0   : > { %v1199_v36 = vrot.slane %v1198_v47, 4 }
 0x1e2   : > { %v1200_v43 = vadd.f32 %v1199_v36, %v1198_v47  ;;  %v3430_v36 = vld [vmem:[#allocation2 + $0x20] sm:$0xff] }
 0x1e4   : > { %v1201_v57 = vrot.slane %v1200_v43, 2 }
 0x1e6   : > { %v1202_v24 = vadd.f32 %v1201_v57, %v1200_v43 }
 0x1e8   : > { %v1203_v32 = vrot.slane %v1202_v24, 1 }
 0x1ea   : > { %v1204_v48 = vadd.f32 %v1203_v32, %v1202_v24  ;;  %v3440_v24 = vld [vmem:[#allocation2 + $0x28] sm:$0xff]  ;;  %v3447_v32 = vld [vmem:[#allocation2 + $0x30] sm:$0xff] }
 0x1ec   : > { %v1205_v44 = vadd.f32 %v1204_v48, %v1129_v39 }
 0x1ee   : > { %1207 = vst [vmem:[#allocation5] sm:$0x1] %v1205_v44  ;;  %v3454_v44 = vld [vmem:[#allocation2 + $0x38] sm:$0xff] }
 0x1f5   : > { %v1604_v30 = vld [vmem:[#allocation5] sm:$0x1] }
 0x1f6   : > { %v1609_v1 = vmul.f32 %v2375_v37, %v1604_v30 }
 0x1f8   : > { %v1613_v4 = vadd.f32 %v2377_v41, %v1609_v1  ;;  %v3461_v1 = vld [vmem:[#allocation2 + $0x40] sm:$0xff] }
 0x1fa   : > { %1615 = vst [vmem:[#allocation5] sm:$0x1] %v1613_v4 }
 0x204   : > { %v784_v45 = vpop.xlane.xlu1 %783 }
 0x205   : > { %v3401_v0 = vmax.f32 %v3396_v40, %v784_v45 }
 0x206   : > { %v782_v14 = vpop.xlane.xlu0 %781 }
 0x207   : > { %1071 = vst.msk [vmem:[#allocation2 + $0x8] sm:$0xff] %vm407_vm6, %v3401_v0  ;;  %v3406_v2 = vmax.f32 %v3398_v63, %v782_v14 }
 0x209   : > { %v829_v20 = vsub.f32 %v3398_v63, %v3406_v2  ;;  %1070 = vst.msk [vmem:[#allocation2] sm:$0xff] %vm407_vm6, %v3406_v2  ;;  %895 = vperm.xlu0 %2338, %v3406_v2   ;;  %v3532_v63 = vld [vmem:[#allocation2 + $0x50] sm:$0xff] }
 0x20a   : > { %v786_v38 = vpop.xlane.xlu1 %785 }
 0x20b   : > { %v3416_v25 = vmax.f32 %v3408_v34, %v786_v38 }
 0x20d   : > { %1072 = vst.msk [vmem:[#allocation2 + $0x10] sm:$0xff] %vm407_vm6, %v3416_v25 }
 0x20e   : > { %v788_v8 = vpop.xlane.xlu1 %787 }
 0x20f   : > { %v3428_v47 = vmax.f32 %v3418_v61, %v788_v8 }
 0x210   : > { %v1395_v22 = vld [vmem:[#allocation2] sm:$0xff] }
 0x211   : > { %v1427_v35 = vmax.f32 %v1395_v22, %v3421_v23  ;;  %1073 = vst.msk [vmem:[#allocation2 + $0x18] sm:$0xff] %vm407_vm6, %v3428_v47 }
 0x212   : > { %v790_v43 = vpop.xlane.xlu1 %789 }
 0x213   : > { %v1443_v18 = vsub.f32 %v1395_v22, %v1427_v35  ;;  %v1507_v57 = vsub.f32 %v3421_v23, %v1427_v35  ;;  %1571 = vst.msk [vmem:[#allocation2] sm:$0xff] %vm407_vm6, %v1427_v35  ;;  %v3438_v31 = vmax.f32 %v3430_v36, %v790_v43  ;;  %v3487_v22 = vadd.f32 %v3132_v12, %v3266_v49 }
 0x214   : > { %v3492_v35 = vadd.f32 %v3132_v12, %v3299_v28  ;;  %v3507_v49 = vadd.f32 %v3132_v12, %v3312_v3  ;;  %v3510_v28 = vld [vmem:[#allocation2 + $0x58] sm:$0xff] }
 0x215   : > { %1074 = vst.msk [vmem:[#allocation2 + $0x20] sm:$0xff] %vm407_vm6, %v3438_v31  ;;  %v1459_v3 = vmul.f32 1.442695, %v1443_v18  ;;  %v1523_v5 = vmul.f32 1.442695, %v1507_v57 }
 0x216   : > { %v792_v46 = vpop.xlane.xlu1 %791 }
 0x217   : > { %v3445_v6 = vmax.f32 %v3440_v24, %v792_v46 }
 0x219   : > { %1075 = vst.msk [vmem:[#allocation2 + $0x28] sm:$0xff] %vm407_vm6, %v3445_v6 }
 0x21a   : > { %v794_v39 = vpop.xlane.xlu1 %793 }
 0x21b   : > { %v3452_v48 = vmax.f32 %v3447_v32, %v794_v39  ;;  %v765_v39 = vld [vmem:[#allocation3] sm:$0xff] }
 0x21d   : > { %1076 = vst.msk [vmem:[#allocation2 + $0x30] sm:$0xff] %vm407_vm6, %v3452_v48 }
 0x21e   : > { %v796_v37 = vpop.xlane.xlu1 %795 }
 0x21f   : > { %v3459_v30 = vmax.f32 %v3454_v44, %v796_v37 }
 0x221   : > { %1077 = vst.msk [vmem:[#allocation2 + $0x38] sm:$0xff] %vm407_vm6, %v3459_v30 }
 0x222   : > { %v798_v41 = vpop.xlane.xlu1 %797 }
 0x223   : > { %v3466_v4 = vmax.f32 %v3461_v1, %v798_v41 }
 0x225   : > { %1078 = vst.msk [vmem:[#allocation2 + $0x40] sm:$0xff] %vm407_vm6, %v3466_v4 }
 0x228   : > { %803 = vmax.xlane.f32.xlu0 %v3470_v52 }
 0x23e   : > { %905 = vperm.xlu0 %2338, %v3416_v25  }
 0x242   : > { %935 = vperm.xlu0 %2338, %v3466_v4  }
 0x284   : > { %v896_v14 = vpop.permute.xlu0 %895 }
 0x285   : > { %v973_v38 = vsub.f32 %v3153_v19, %v896_v14  ;;  %v3497_v19 = vadd.f32 %v3132_v12, %v3296_v26  ;;  %v845_v12 = vmul.f32 1.442695, %v829_v20 }
 0x287   : > { %v989_v23 = vmul.f32 1.442695, %v973_v38  ;;  %v3526_v38 = vld [vmem:[#allocation2 + $0x48] sm:$0xff] }
 0x289   : > { %2378 = vpow2.f32 %v989_v23 }
 0x28a   : > { %2380 = vpow2.f32 %v845_v12  ;;  %v3542_v12 = vld [vmem:[#allocation2 + $0x60] sm:$0xff] }
 0x28b   : > { %2382 = vpow2.f32 %v1459_v3 }
 0x28c   : > { %2384 = vpow2.f32 %v1523_v5  ;;  %v4048_v5 = vsel %vm3139_vm5, %v3144_v16, 0.0  ;;  %v1215_v16 = vld [vmem:[%s2989_s2 + $0x18] sm:$0xff] }
 0x296   : > { %v2379_v8 = vpop.eup %2378 }
 0x297   : > { %1021 = vadd.xlane.f32.xlu1 %v2379_v8  ;;  %v2381_v46 = vpop.eup %2380 }
 0x298   : > { %v877_v37 = vmul.f32 %v2381_v46, %v765_v39  ;;  %v2383_v57 = vpop.eup %2382 }
 0x299   : > { %v2385_v46 = vpop.eup %2384 }
 0x29b   : > { %799 = vmax.xlane.f32.xlu1 %v3482_v42 }
 0x29f   : > { %801 = vmax.xlane.f32.xlu1 %v3487_v22 }
 0x2a3   : > { %805 = vmax.xlane.f32.xlu1 %v3492_v35 }
 0x2a7   : > { %807 = vmax.xlane.f32.xlu1 %v3497_v19 }
 0x2ab   : > { %809 = vmax.xlane.f32.xlu1 %v3502_v7 }
 0x2af   : > { %811 = vmax.xlane.f32.xlu1 %v3507_v49 }
 0x2b1   : > { %v804_v43 = vpop.xlane.xlu0 %803 }
 0x2b2   : > { %v3513_v26 = vmax.f32 %v3510_v28, %v804_v43 }
 0x2b4   : > { %1081 = vst.msk [vmem:[#allocation2 + $0x58] sm:$0xff] %vm407_vm6, %v3513_v26 }
 0x2c0   : > { %900 = vperm.xlu1 %2339, %v3401_v0  }
 0x2c4   : > { %910 = vperm.xlu1 %2339, %v3428_v47  }
 0x2c8   : > { %915 = vperm.xlu1 %2339, %v3438_v31  }
 0x2cc   : > { %920 = vperm.xlu1 %2339, %v3445_v6  }
 0x2d0   : > { %925 = vperm.xlu1 %2339, %v3452_v48  }
 0x2d4   : > { %930 = vperm.xlu1 %2339, %v3459_v30  }
 0x320   : > { %v1022_v41 = vpop.xlane.xlu1 %1021 }
 0x321   : > { %v1053_v14 = vadd.f32 %v1022_v41, %v877_v37 }
 0x323   : > { %1086 = vst.msk [vmem:[#allocation3] sm:$0xff] %vm407_vm6, %v1053_v14  ;;  %v3553_v14 = vld [vmem:[#allocation2 + $0x68] sm:$0xff] }
 0x324   : > { %v800_v23 = vpop.xlane.xlu1 %799  ;;  %4042 = vst [vmem:[#allocation30_spill] sm:$0xff] %v3553_v14 }
 0x325   : > { %v3530_v8 = vmax.f32 %v3526_v38, %v800_v23 }
 0x327   : > { %1079 = vst.msk [vmem:[#allocation2 + $0x48] sm:$0xff] %vm407_vm6, %v3530_v8  ;;  %940 = vperm.xlu1 %2339, %v3530_v8  }
 0x328   : > { %v802_v20 = vpop.xlane.xlu1 %801 }
 0x329   : > { %v3540_v18 = vmax.f32 %v3532_v63, %v802_v20 }
 0x32a   : > { %v1411_v43 = vld [vmem:[#allocation3] sm:$0xff] }
 0x32b   : > { %v1491_v3 = vmul.f32 %v2383_v57, %v1411_v43  ;;  %1080 = vst.msk [vmem:[#allocation2 + $0x50] sm:$0xff] %vm407_vm6, %v3540_v18  ;;  %945 = vperm.xlu0 %2338, %v3540_v18   ;;  %950 = vperm.xlu1 %2339, %v3513_v26   ;;  %v3564_v43 = vld [vmem:[#allocation2 + $0x70] sm:$0xff] }
 0x32c   : > { %v806_v39 = vpop.xlane.xlu1 %805  ;;  %4044 = vst [vmem:[#allocation32_spill] sm:$0xff] %v3564_v43 }
 0x32d   : > { %v1555_v37 = vadd.f32 %v2385_v46, %v1491_v3  ;;  %v3551_v41 = vmax.f32 %v3542_v12, %v806_v39 }
 0x32f   : > { %1587 = vst.msk [vmem:[#allocation3] sm:$0xff] %vm407_vm6, %v1555_v37  ;;  %1082 = vst.msk [vmem:[#allocation2 + $0x60] sm:$0xff] %vm407_vm6, %v3551_v41  ;;  %955 = vperm.xlu0 %2338, %v3551_v41   ;;  %v3574_v37 = vld [vmem:[#allocation2 + $0x78] sm:$0xff] }
 0x330   : > { %v808_v20 = vpop.xlane.xlu1 %807  ;;  %4046 = vst [vmem:[#allocation34_spill] sm:$0xff] %v3574_v37 }
 0x331   : > { %v3562_v57 = vmax.f32 %v3553_v14, %v808_v20 }
 0x333   : > { %4043 = vst [vmem:[#allocation31_spill] sm:$0xff] %v3562_v57  ;;  %1083 = vst.msk [vmem:[#allocation2 + $0x68] sm:$0xff] %vm407_vm6, %v3562_v57  ;;  %960 = vperm.xlu1 %2339, %v3562_v57  }
 0x334   : > { %v810_v46 = vpop.xlane.xlu1 %809 }
 0x335   : > { %v3572_v39 = vmax.f32 %v3564_v43, %v810_v46  ;;  %v1875_v46 = vld [vmem:[#allocation5] sm:$0x1] }
 0x336   : > { %2386 = vlog2.f32 %v1875_v46  ;;  %v1745_v20 = vld [vmem:[#allocation3] sm:$0xff]  ;;  %v1213_v46 = vld [vmem:[%s2989_s2 + $0x8] sm:$0xff] }
 0x337   : > { %4045 = vst [vmem:[#allocation33_spill] sm:$0xff] %v3572_v39  ;;  %1084 = vst.msk [vmem:[#allocation2 + $0x70] sm:$0xff] %vm407_vm6, %v3572_v39  ;;  %965 = vperm.xlu0 %2338, %v3572_v39   ;;  %2388 = vlog2.f32 %v1745_v20  ;;  %v1874_v39 = vld [vmem:[#allocation4] sm:$0x1] }
 0x338   : > { %v812_v3 = vpop.xlane.xlu1 %811  ;;  %v1729_v20 = vld [vmem:[#allocation2] sm:$0xff] }
 0x339   : > { %v3582_v23 = vmax.f32 %v3574_v37, %v812_v3 }
 0x33b   : > { %4047 = vst [vmem:[#allocation35_spill] sm:$0xff] %v3582_v23  ;;  %1085 = vst.msk [vmem:[#allocation2 + $0x78] sm:$0xff] %vm407_vm6, %v3582_v23  ;;  %970 = vperm.xlu1 %2339, %v3582_v23  }
 0x33c   : > { %v901_v57 = vpop.permute.xlu1 %900 }
 0x340   : > { %v911_v14 = vpop.permute.xlu1 %910 }
 0x343   : > { %v2387_v2 = vpop.eup %2386 }
 0x344   : > { %v1877_v45 = vmul.f32 0.6931472, %v2387_v2  ;;  %v2389_v21 = vpop.eup %2388 }
 0x345   : > { %v1762_v43 = vmul.f32 0.6931472, %v2389_v21  ;;  %v1245_v21 = vmul.f32 %v1213_v46, %v3056_v50  ;;  %v1216_v50 = vld [vmem:[%s2989_s2 + $0x20] sm:$0xff]  ;;  %v906_v46 = vpop.permute.xlu0 %905 }
 0x346   : > { %v1878_v3 = vadd.f32 %v1877_v45, %v1874_v39  ;;  %v1214_v45 = vld [vmem:[%s2989_s2 + $0x10] sm:$0xff]  ;;  %v916_v39 = vpop.permute.xlu1 %915 }
 0x347   : > { %v1793_v2 = vadd.f32 %v1762_v43, %v1729_v20  ;;  %v1246_v43 = vmul.f32 %v1214_v45, %v3059_v51  ;;  %v1218_v20 = vld [vmem:[%s2989_s2 + $0x30] sm:$0xff] }
 0x348   : > { %v1879_v23 = vsel %vm681_vm3, %v1878_v3, 0.0  ;;  %v1219_v3 = vld [vmem:[%s2989_s2 + $0x38] sm:$0xff] }
 0x349   : > { %v1882_v37 = vsel %vm1881_vm7, %v1879_v23, 0.0  ;;  %v1809_v15 = vsel %vm683_vm4, %v1793_v2, 0.0  ;;  %v1217_v23 = vld [vmem:[%s2989_s2 + $0x28] sm:$0xff]  ;;  %v1251_v51 = vmul.f32 %v1219_v3, %v3081_v58  ;;  %v977_v58 = vsub.f32 %v3240_v33, %v916_v39  ;;  %v1224_v3 = vld [vmem:[%s2989_s2 + $0x60] sm:$0xff]  ;;  %v936_v33 = vpop.permute.xlu0 %935 }
 0x34a   : > { %v1826_v10 = vsel %vm407_vm6, %v1809_v15, 0.0  ;;  %v1249_v9 = vmul.f32 %v1217_v23, %v3073_v55  ;;  %v921_v2 = vpop.permute.xlu1 %920  ;;  %v975_v15 = vsub.f32 %v3167_v27, %v906_v46  ;;  %v974_v55 = vsub.f32 %v3148_v17, %v901_v57  ;;  %v4049_v57 = vld [vmem:[#allocation22_spill] sm:$0xff] }
 0x34b   : > { %v976_v27 = vsub.f32 %v3235_v29, %v911_v14  ;;  %v4052_v14 = vld [vmem:[#allocation24_spill] sm:$0xff] }
 0x34c   : > { %v991_v23 = vmul.f32 1.442695, %v974_v55  ;;  %v1226_v55 = vld [vmem:[%s2989_s2 + $0x70] sm:$0xff] }
 0x34d   : > { %v995_v39 = vmul.f32 1.442695, %v976_v27 }
 0x356   : > { %1712 = vadd.xlane.f32.xlu0 %v4048_v5  ;;  %v1247_v5 = vmul.f32 %v1215_v16, %v3065_v53  ;;  %v1250_v53 = vmul.f32 %v1218_v20, %v3076_v56  ;;  %v1220_v16 = vld [vmem:[%s2989_s2 + $0x40] sm:$0xff]  ;;  %v1222_v56 = vld [vmem:[%s2989_s2 + $0x50] sm:$0xff] }
 0x357   : > { %v1252_v45 = vmul.f32 %v1220_v16, %v3084_v59  ;;  %v997_v59 = vmul.f32 1.442695, %v977_v58  ;;  %v4051_v20 = vld [vmem:[#allocation27_spill] sm:$0xff]  ;;  %v4056_v58 = vld [vmem:[#allocation25_spill] sm:$0xff] }
 0x358   : > { %v978_v46 = vsub.f32 %v4051_v20, %v921_v2 }
 0x35a   : > { %1883 = vadd.xlane.f32.xlu0 %v1882_v37  ;;  %v1248_v37 = vmul.f32 %v1216_v50, %v3068_v54  ;;  %v1225_v50 = vld [vmem:[%s2989_s2 + $0x68] sm:$0xff] }
 0x35e   : > { %1262 = vadd.xlane.f32.xlu0 %v1245_v21  ;;  %v1221_v21 = vld [vmem:[%s2989_s2 + $0x48] sm:$0xff] }
 0x35f   : > { %1857 = vadd.xlane.f32.xlu1 %v1826_v10  ;;  %v1253_v54 = vmul.f32 %v1221_v21, %v3089_v60  ;;  %v1223_v10 = vld [vmem:[%s2989_s2 + $0x58] sm:$0xff]  ;;  %v1254_v60 = vmul.f32 %v1222_v56, %v4049_v57 }
 0x360   : > { %v1255_v17 = vmul.f32 %v1223_v10, %v3097_v62  ;;  %v1257_v62 = vmul.f32 %v1225_v50, %v4052_v14  ;;  %v1227_v21 = vld [vmem:[%s2989_s2 + $0x78] sm:$0xff] }
 0x362   : > { %1266 = vadd.xlane.f32.xlu0 %v1247_v5  ;;  %v993_v5 = vmul.f32 1.442695, %v975_v15  ;;  %v981_v15 = vsub.f32 %v3317_v13, %v936_v33 }
 0x363   : > { %1264 = vadd.xlane.f32.xlu1 %v1246_v43  ;;  %v926_v43 = vpop.permute.xlu1 %925 }
 0x364   : > { %2390 = vpow2.f32 %v993_v5  ;;  %v4055_v5 = vld [vmem:[#allocation26_spill] sm:$0xff]  ;;  %v1005_v56 = vmul.f32 1.442695, %v981_v15 }
 0x365   : > { %2392 = vpow2.f32 %v991_v23  ;;  %v1259_v2 = vmul.f32 %v1227_v21, %v4055_v5 }
 0x366   : > { %1270 = vadd.xlane.f32.xlu0 %v1249_v9  ;;  %v4050_v9 = vld [vmem:[#allocation28_spill] sm:$0xff]  ;;  %2394 = vpow2.f32 %v997_v59 }
 0x367   : > { %1268 = vadd.xlane.f32.xlu1 %v1248_v37  ;;  %v979_v37 = vsub.f32 %v4050_v9, %v926_v43  ;;  %v931_v29 = vpop.permute.xlu1 %930  ;;  %2396 = vpow2.f32 %v995_v39  ;;  %v1258_v43 = vmul.f32 %v1226_v55, %v4056_v58 }
 0x369   : > { %v1001_v16 = vmul.f32 1.442695, %v979_v37 }
 0x36a   : > { %1274 = vadd.xlane.f32.xlu0 %v1251_v51  ;;  %v4053_v51 = vld [vmem:[#allocation23_spill] sm:$0xff] }
 0x36b   : > { %1272 = vadd.xlane.f32.xlu1 %v1250_v53  ;;  %v1256_v53 = vmul.f32 %v1224_v3, %v4053_v51  ;;  %2398 = vpow2.f32 %v1001_v16 }
 0x36e   : > { %1278 = vadd.xlane.f32.xlu0 %v1253_v54  ;;  %v999_v54 = vmul.f32 1.442695, %v978_v46 }
 0x36f   : > { %1276 = vadd.xlane.f32.xlu1 %v1252_v45  ;;  %v4054_v45 = vld [vmem:[#allocation29_spill] sm:$0xff] }
 0x370   : > { %v980_v10 = vsub.f32 %v4054_v45, %v931_v29  ;;  %2400 = vpow2.f32 %v999_v54 }
 0x371   : > { %2402 = vpow2.f32 %v1005_v56  ;;  %v2391_v13 = vpop.eup %2390 }
 0x372   : > { %1282 = vadd.xlane.f32.xlu0 %v1255_v17  ;;  %v1003_v23 = vmul.f32 1.442695, %v980_v10  ;;  %v2393_v27 = vpop.eup %2392 }
 0x373   : > { %1280 = vadd.xlane.f32.xlu1 %v1254_v60  ;;  %v2395_v17 = vpop.eup %2394 }
 0x374   : > { %2404 = vpow2.f32 %v1003_v23  ;;  %v2397_v57 = vpop.eup %2396 }
 0x376   : > { %1286 = vadd.xlane.f32.xlu0 %v1257_v62 }
 0x377   : > { %1284 = vadd.xlane.f32.xlu1 %v1256_v53 }
 0x378   : > { %v2399_v60 = vpop.eup %2398 }
 0x37a   : > { %1290 = vadd.xlane.f32.xlu0 %v1259_v2 }
 0x37b   : > { %1288 = vadd.xlane.f32.xlu1 %v1258_v43 }
 0x37d   : > { %v2401_v50 = vpop.eup %2400 }
 0x37e   : > { %1025 = vadd.xlane.f32.xlu0 %v2391_v13  ;;  %v2403_v59 = vpop.eup %2402 }
 0x37f   : > { %1023 = vadd.xlane.f32.xlu1 %v2393_v27 }
 0x381   : > { %v2405_v9 = vpop.eup %2404 }
 0x382   : > { %1029 = vadd.xlane.f32.xlu0 %v2395_v17 }
 0x383   : > { %1027 = vadd.xlane.f32.xlu1 %v2397_v57 }
 0x386   : > { %1033 = vadd.xlane.f32.xlu0 %v2399_v60  ;;  %v830_v60 = vsub.f32 %v3396_v40, %v3401_v0 }
 0x387   : > { %1031 = vadd.xlane.f32.xlu1 %v2401_v50 }
 0x38a   : > { %1037 = vadd.xlane.f32.xlu0 %v2403_v59 }
 0x38b   : > { %1035 = vadd.xlane.f32.xlu1 %v2405_v9 }
 0x3a2   : > { %v941_v37 = vpop.permute.xlu1 %940 }
 0x3a3   : > { %v982_v3 = vsub.f32 %v3482_v42, %v941_v37 }
 0x3a5   : > { %v1007_v33 = vmul.f32 1.442695, %v982_v3  ;;  %v833_v3 = vsub.f32 %v3430_v36, %v3438_v31 }
 0x3a6   : > { %v951_v39 = vpop.permute.xlu1 %950  ;;  %v946_v20 = vpop.permute.xlu0 %945 }
 0x3a7   : > { %2406 = vpow2.f32 %v1007_v33  ;;  %v984_v46 = vsub.f32 %v3470_v52, %v951_v39  ;;  %v983_v29 = vsub.f32 %v3487_v22, %v946_v20  ;;  %v3650_v39 = vld [vmem:[#allocation2 + $0x8] sm:$0xff] }
 0x3a9   : > { %v1011_v14 = vmul.f32 1.442695, %v984_v46  ;;  %v1009_v62 = vmul.f32 1.442695, %v983_v29 }
 0x3aa   : > { %v956_v51 = vpop.permute.xlu0 %955 }
 0x3ab   : > { %2408 = vpow2.f32 %v1011_v14  ;;  %v985_v53 = vsub.f32 %v3492_v35, %v956_v51  ;;  %v847_v14 = vmul.f32 1.442695, %v830_v60  ;;  %v3723_v60 = vld [vmem:[#allocation2 + $0x30] sm:$0xff] }
 0x3ac   : > { %2410 = vpow2.f32 %v1009_v62  ;;  %v4057_v62 = vsub.f32 %v3408_v34, %v3416_v25  ;;  %v3673_v25 = vld [vmem:[#allocation2 + $0x10] sm:$0xff] }
 0x3ad   : > { %v1013_v21 = vmul.f32 1.442695, %v985_v53  ;;  %v853_v53 = vmul.f32 1.442695, %v833_v3 }
 0x3ae   : > { %v961_v15 = vpop.permute.xlu1 %960  ;;  %v849_v51 = vmul.f32 1.442695, %v4057_v62  ;;  %v3751_v62 = vld [vmem:[#allocation2 + $0x40] sm:$0xff] }
 0x3af   : > { %2412 = vpow2.f32 %v1013_v21  ;;  %v986_v42 = vsub.f32 %v3497_v19, %v961_v15 }
 0x3b1   : > { %v1015_v16 = vmul.f32 1.442695, %v986_v42  ;;  %v3664_v42 = vld [vmem:[#allocation2 + $0x18] sm:$0xff] }
 0x3b2   : > { %v966_v55 = vpop.permute.xlu0 %965 }
 0x3b3   : > { %2414 = vpow2.f32 %v1015_v16  ;;  %v987_v54 = vsub.f32 %v3502_v7, %v966_v55 }
 0x3b4   : > { %v2407_v52 = vpop.eup %2406 }
 0x3b5   : > { %v1017_v45 = vmul.f32 1.442695, %v987_v54  ;;  %1039 = vadd.xlane.f32.xlu1 %v2407_v52 }
 0x3b6   : > { %v971_v22 = vpop.permute.xlu1 %970 }
 0x3b7   : > { %2416 = vpow2.f32 %v1017_v45  ;;  %v988_v10 = vsub.f32 %v3507_v49, %v971_v22 }
 0x3b8   : > { %v2409_v5 = vpop.eup %2408 }
 0x3b9   : > { %v2411_v35 = vpop.eup %2410  ;;  %v1019_v2 = vmul.f32 1.442695, %v988_v10  ;;  %1043 = vadd.xlane.f32.xlu1 %v2409_v5  ;;  %v3686_v10 = vld [vmem:[#allocation2 + $0x28] sm:$0xff] }
 0x3ba   : > { %1041 = vadd.xlane.f32.xlu0 %v2411_v35 }
 0x3bb   : > { %2418 = vpow2.f32 %v1019_v2 }
 0x3bc   : > { %v2413_v58 = vpop.eup %2412  ;;  %2420 = vpow2.f32 %v847_v14 }
 0x3bd   : > { %2422 = vpow2.f32 %v849_v51 }
 0x3be   : > { %1045 = vadd.xlane.f32.xlu0 %v2413_v58  ;;  %2424 = vpow2.f32 %v853_v53  ;;  %v3695_v58 = vld [vmem:[#allocation2 + $0x20] sm:$0xff] }
 0x3c0   : > { %v2415_v19 = vpop.eup %2414 }
 0x3c1   : > { %1047 = vadd.xlane.f32.xlu1 %v2415_v19  ;;  %v832_v19 = vsub.f32 %v3418_v61, %v3428_v47  ;;  %v3712_v61 = vld [vmem:[#allocation2 + $0x38] sm:$0xff] }
 0x3c4   : > { %v2417_v43 = vpop.eup %2416 }
 0x3c5   : > { %1049 = vadd.xlane.f32.xlu0 %v2417_v43 }
 0x3c8   : > { %v2419_v7 = vpop.eup %2418 }
 0x3c9   : > { %1051 = vadd.xlane.f32.xlu1 %v2419_v7 }
 0x3df   : > { %v1713_v56 = vpop.xlane.xlu0 %1712 }
 0x3e0   : > { %v1714_v23 = vrot.slane %v1713_v56, 4 }
 0x3e2   : > { %v1715_v13 = vadd.f32 %v1714_v23, %v1713_v56 }
 0x3e3   : > { %v1884_v27 = vpop.xlane.xlu0 %1883 }
 0x3e4   : > { %v1716_v17 = vrot.slane %v1715_v13, 2  ;;  %v1885_v49 = vrot.slane %v1884_v27, 4 }
 0x3e6   : > { %v1717_v57 = vadd.f32 %v1716_v17, %v1715_v13  ;;  %v1886_v33 = vadd.f32 %v1885_v49, %v1884_v27  ;;  %v834_v27 = vsub.f32 %v3440_v24, %v3445_v6  ;;  %v835_v49 = vsub.f32 %v3447_v32, %v3452_v48 }
 0x3e7   : > { %v1263_v50 = vpop.xlane.xlu0 %1262  ;;  %v836_v24 = vsub.f32 %v3454_v44, %v3459_v30  ;;  %v3740_v30 = vld [vmem:[#allocation2 + $0x48] sm:$0xff] }
 0x3e8   : > { %v3646_v59 = vmul.f32 %v1263_v50, %v3126_v11  ;;  %v1858_v9 = vpop.xlane.xlu1 %1857  ;;  %v1718_v37 = vrot.slane %v1717_v57, 1  ;;  %v1887_v21 = vrot.slane %v1886_v33, 2  ;;  %v851_v50 = vmul.f32 1.442695, %v832_v19 }
 0x3e9   : > { %v1859_v20 = vrot.slane %v1858_v9, 4  ;;  %v855_v48 = vmul.f32 1.442695, %v834_v27  ;;  %v859_v14 = vmul.f32 1.442695, %v836_v24 }
 0x3ea   : > { %v3654_v46 = vmax.f32 %v3650_v39, %v3646_v59  ;;  %v1719_v29 = vadd.f32 %v1718_v37, %v1717_v57  ;;  %v1888_v35 = vadd.f32 %v1887_v21, %v1886_v33  ;;  %2426 = vpow2.f32 %v851_v50 }
 0x3eb   : > { %v1860_v40 = vadd.f32 %v1859_v20, %v1858_v9  ;;  %v1267_v0 = vpop.xlane.xlu0 %1266  ;;  %v857_v20 = vmul.f32 1.442695, %v835_v49  ;;  %2428 = vpow2.f32 %v855_v48 }
 0x3ec   : > { %1572 = vst.msk [vmem:[#allocation2 + $0x8] sm:$0xff] %vm407_vm6, %v3654_v46  ;;  %v3662_v36 = vmul.f32 %v1267_v0, %v3126_v11  ;;  %v1265_v31 = vpop.xlane.xlu1 %1264  ;;  %v1889_v17 = vrot.slane %v1888_v35, 1  ;;  %v1444_v44 = vsub.f32 %v3650_v39, %v3654_v46  ;;  %v2421_v39 = vpop.eup %2420 }
 0x3ed   : > { %2223 = vpush %v1719_v29  ;;  %v1861_v15 = vrot.slane %v1860_v40, 2  ;;  %v3667_v16 = vmul.f32 %v1265_v31, %v3126_v11  ;;  %v4058_v31 = vsub.f32 %v3461_v1, %v3466_v4  ;;  %v767_v4 = vld [vmem:[#allocation3 + $0x10] sm:$0xff]  ;;  %2430 = vpow2.f32 %v857_v20  ;;  %v3803_v20 = vld [vmem:[#allocation2 + $0x68] sm:$0xff] }
 0x3ee   : > { %v3671_v34 = vmax.f32 %v3664_v42, %v3662_v36  ;;  %v1890_v3 = vadd.f32 %v1889_v17, %v1888_v35  ;;  %v1461_v19 = vmul.f32 1.442695, %v1444_v44  ;;  %2432 = vpow2.f32 %v859_v14 }
 0x3ef   : > { %v3677_v55 = vmax.f32 %v3673_v25, %v3667_v16  ;;  %v1271_v54 = vpop.xlane.xlu0 %1270  ;;  %v1862_v22 = vadd.f32 %v1861_v15, %v1860_v40  ;;  %v1508_v40 = vsub.f32 %v3646_v59, %v3654_v46  ;;  %v861_v53 = vmul.f32 1.442695, %v4058_v31  ;;  %v2423_v46 = vpop.eup %2422 }
 0x3f0   : > { %1574 = vst.msk [vmem:[#allocation2 + $0x18] sm:$0xff] %vm407_vm6, %v3671_v34  ;;  %v3682_v52 = vmul.f32 %v1271_v54, %v3126_v11  ;;  %v1269_v45 = vpop.xlane.xlu1 %1268  ;;  %v1446_v54 = vsub.f32 %v3664_v42, %v3671_v34  ;;  %v2425_v35 = vpop.eup %2424 }
 0x3f1   : > { %1573 = vst.msk [vmem:[#allocation2 + $0x10] sm:$0xff] %vm407_vm6, %v3677_v55  ;;  %v3689_v5 = vmul.f32 %v1269_v45, %v3126_v11  ;;  %v1863_v13 = vrot.slane %v1862_v22, 1  ;;  %v3767_v45 = vld [vmem:[#allocation2 + $0x58] sm:$0xff]  ;;  %v1525_v27 = vmul.f32 1.442695, %v1508_v40  ;;  %v1509_v17 = vsub.f32 %v3667_v16, %v3677_v55  ;;  %v3814_v40 = vld [vmem:[#allocation2 + $0x60] sm:$0xff] }
 0x3f2   : > { %v3693_v2 = vmax.f32 %v3686_v10, %v3682_v52  ;;  %2434 = vpow2.f32 %v861_v53 }
 0x3f3   : > { %v3701_v43 = vmax.f32 %v3695_v58, %v3689_v5  ;;  %v1275_v7 = vpop.xlane.xlu0 %1274  ;;  %v1864_v37 = vadd.f32 %v1863_v13, %v1862_v22  ;;  %v766_v22 = vld [vmem:[#allocation3 + $0x8] sm:$0xff]  ;;  %v769_v13 = vld [vmem:[#allocation3 + $0x20] sm:$0xff]  ;;  %2436 = vpow2.f32 %v1461_v19 }
 0x3f4   : > { %1576 = vst.msk [vmem:[#allocation2 + $0x28] sm:$0xff] %vm407_vm6, %v3693_v2  ;;  %v3706_v56 = vmul.f32 %v1275_v7, %v3126_v11  ;;  %v1273_v23 = vpop.xlane.xlu1 %1272  ;;  %v1445_v7 = vsub.f32 %v3673_v25, %v3677_v55  ;;  %v3799_v55 = vmul.f32 %v2425_v35, %v769_v13  ;;  %2438 = vpow2.f32 %v1525_v27  ;;  %v3842_v35 = vld [vmem:[#allocation2 + $0x70] sm:$0xff] }
 0x3f5   : > { %1575 = vst.msk [vmem:[#allocation2 + $0x20] sm:$0xff] %vm407_vm6, %v3701_v43  ;;  %v3715_v47 = vmul.f32 %v1273_v23, %v3126_v11  ;;  %v3780_v23 = vld [vmem:[#allocation2 + $0x50] sm:$0xff]  ;;  %v1447_v50 = vsub.f32 %v3695_v58, %v3701_v43  ;;  %v1511_v48 = vsub.f32 %v3689_v5, %v3701_v43  ;;  %v1510_v58 = vsub.f32 %v3662_v36, %v3671_v34 }
 0x3f6   : > { %v3721_v57 = vmax.f32 %v3712_v61, %v3706_v56  ;;  %2225 = vpush %v1864_v37  ;;  %v878_v37 = vmul.f32 %v2421_v39, %v766_v22  ;;  %v1527_v5 = vmul.f32 1.442695, %v1509_v17  ;;  %v1448_v43 = vsub.f32 %v3686_v10, %v3693_v2 }
 0x3f7   : > { %v3729_v6 = vmax.f32 %v3723_v60, %v3715_v47  ;;  %v1279_v9 = vpop.xlane.xlu0 %1278  ;;  %2227 = vpush %v1890_v3  ;;  %v1463_v3 = vmul.f32 1.442695, %v1445_v7  ;;  %v1467_v39 = vmul.f32 1.442695, %v1447_v50  ;;  %v1531_v10 = vmul.f32 1.442695, %v1511_v48 }
 0x3f8   : > { %1578 = vst.msk [vmem:[#allocation2 + $0x38] sm:$0xff] %vm407_vm6, %v3721_v57  ;;  %v1277_v32 = vpop.xlane.xlu1 %1276  ;;  %v3736_v33 = vmul.f32 %v1279_v9, %v3126_v11  ;;  %v879_v9 = vmul.f32 %v2423_v46, %v767_v4  ;;  %v3829_v46 = vld [vmem:[#allocation2 + $0x78] sm:$0xff]  ;;  %v1469_v19 = vmul.f32 1.442695, %v1448_v43 }
 0x3f9   : > { %1577 = vst.msk [vmem:[#allocation2 + $0x30] sm:$0xff] %vm407_vm6, %v3729_v6  ;;  %v3743_v29 = vmul.f32 %v1277_v32, %v3126_v11  ;;  %v1465_v32 = vmul.f32 1.442695, %v1446_v54  ;;  %v1449_v36 = vsub.f32 %v3723_v60, %v3729_v6  ;;  %v1529_v54 = vmul.f32 1.442695, %v1510_v58  ;;  %v768_v50 = vld [vmem:[#allocation3 + $0x18] sm:$0xff] }
 0x3fa   : > { %v3749_v0 = vmax.f32 %v3740_v30, %v3736_v33  ;;  %v1513_v4 = vsub.f32 %v3715_v47, %v3729_v6  ;;  %v2427_v47 = vpop.eup %2426 }
 0x3fb   : > { %v1283_v51 = vpop.xlane.xlu0 %1282  ;;  %v3758_v21 = vmax.f32 %v3751_v62, %v3743_v29  ;;  %2440 = vpow2.f32 %v1465_v32  ;;  %v1471_v6 = vmul.f32 1.442695, %v1449_v36  ;;  %v771_v36 = vld [vmem:[#allocation3 + $0x30] sm:$0xff] }
 0x3fc   : > { %v3761_v15 = vmul.f32 %v1283_v51, %v3126_v11  ;;  %v1281_v59 = vpop.xlane.xlu1 %1280  ;;  %1580 = vst.msk [vmem:[#allocation2 + $0x48] sm:$0xff] %vm407_vm6, %v3749_v0  ;;  %2442 = vpow2.f32 %v1463_v3  ;;  %v1535_v32 = vmul.f32 1.442695, %v1513_v4 }
 0x3fd   : > { %v3770_v1 = vmul.f32 %v1281_v59, %v3126_v11  ;;  %1579 = vst.msk [vmem:[#allocation2 + $0x40] sm:$0xff] %vm407_vm6, %v3758_v21  ;;  %2444 = vpow2.f32 %v1527_v5  ;;  %v1451_v27 = vsub.f32 %v3751_v62, %v3758_v21  ;;  %v2429_v62 = vpop.eup %2428  ;;  %v1515_v48 = vsub.f32 %v3743_v29, %v3758_v21 }
 0x3fe   : > { %v3778_v42 = vmax.f32 %v3767_v45, %v3761_v15  ;;  %2446 = vpow2.f32 %v1467_v39  ;;  %v2431_v5 = vpop.eup %2430  ;;  %v880_v39 = vmul.f32 %v2427_v47, %v768_v50 }
 0x3ff   : > { %v3786_v49 = vmax.f32 %v3780_v23, %v3770_v1  ;;  %v1287_v25 = vpop.xlane.xlu0 %1286  ;;  %2448 = vpow2.f32 %v1531_v10  ;;  %v1475_v10 = vmul.f32 1.442695, %v1451_v27  ;;  %v773_v27 = vld [vmem:[#allocation3 + $0x40] sm:$0xff] }
 0x400   : > { %1582 = vst.msk [vmem:[#allocation2 + $0x58] sm:$0xff] %vm407_vm6, %v3778_v42  ;;  %v1285_v24 = vpop.xlane.xlu1 %1284  ;;  %v3797_v16 = vmul.f32 %v1287_v25, %v3126_v11  ;;  %2450 = vpow2.f32 %v1529_v54 }
 0x401   : > { %1581 = vst.msk [vmem:[#allocation2 + $0x50] sm:$0xff] %vm407_vm6, %v3786_v49  ;;  %v3806_v44 = vmul.f32 %v1285_v24, %v3126_v11  ;;  %2452 = vpow2.f32 %v1471_v6 }
 0x402   : > { %v3812_v14 = vmax.f32 %v3803_v20, %v3797_v16  ;;  %2454 = vpow2.f32 %v1469_v19  ;;  %v772_v19 = vld [vmem:[#allocation3 + $0x38] sm:$0xff] }
 0x403   : > { %v1291_v51 = vpop.xlane.xlu0 %1290  ;;  %v3820_v34 = vmax.f32 %v3814_v40, %v3806_v44  ;;  %2456 = vpow2.f32 %v1535_v32 }
 0x404   : > { %v3823_v31 = vmul.f32 %v1291_v51, %v3126_v11  ;;  %v1289_v53 = vpop.xlane.xlu1 %1288  ;;  %v1520_v59 = vsub.f32 %v3797_v16, %v3812_v14  ;;  %1584 = vst.msk [vmem:[#allocation2 + $0x68] sm:$0xff] %vm407_vm6, %v3812_v14 }
 0x405   : > { %v3832_v60 = vmul.f32 %v1289_v53, %v3126_v11  ;;  %1583 = vst.msk [vmem:[#allocation2 + $0x60] sm:$0xff] %vm407_vm6, %v3820_v34  ;;  %v1512_v11 = vsub.f32 %v3682_v52, %v3693_v2  ;;  %v1450_v52 = vsub.f32 %v3712_v61, %v3721_v57  ;;  %v1514_v61 = vsub.f32 %v3706_v56, %v3721_v57  ;;  %v2433_v53 = vpop.eup %2432 }
 0x406   : > { %v3840_v22 = vmax.f32 %v3829_v46, %v3823_v31  ;;  %v1539_v56 = vmul.f32 1.442695, %v1515_v48  ;;  %v883_v57 = vmul.f32 %v2431_v5, %v771_v36 }
 0x407   : > { %v3848_v7 = vmax.f32 %v3842_v35, %v3832_v60  ;;  %v1026_v13 = vpop.xlane.xlu0 %1025  ;;  %v1533_v43 = vmul.f32 1.442695, %v1512_v11  ;;  %v1473_v54 = vmul.f32 1.442695, %v1450_v52 }
 0x408   : > { %v1458_v17 = vsub.f32 %v3829_v46, %v3840_v22  ;;  %1586 = vst.msk [vmem:[#allocation2 + $0x78] sm:$0xff] %vm407_vm6, %v3840_v22  ;;  %v1024_v25 = vpop.xlane.xlu1 %1023  ;;  %v1522_v2 = vsub.f32 %v3823_v31, %v3840_v22  ;;  %v1055_v58 = vadd.f32 %v1026_v13, %v879_v9  ;;  %v770_v9 = vld [vmem:[#allocation3 + $0x28] sm:$0xff]  ;;  %v1537_v13 = vmul.f32 1.442695, %v1514_v61 }
 0x409   : > { %v1521_v24 = vsub.f32 %v3832_v60, %v3848_v7  ;;  %1585 = vst.msk [vmem:[#allocation2 + $0x70] sm:$0xff] %vm407_vm6, %v3848_v7  ;;  %v1054_v3 = vadd.f32 %v1024_v25, %v878_v37  ;;  %v2435_v37 = vpop.eup %2434  ;;  %2458 = vpow2.f32 %v1533_v43  ;;  %v882_v6 = vmul.f32 %v2429_v62, %v770_v9 }
 0x40a   : > { %1088 = vst.msk [vmem:[#allocation3 + $0x10] sm:$0xff] %vm407_vm6, %v1055_v58  ;;  %v2437_v11 = vpop.eup %2436  ;;  %2460 = vpow2.f32 %v1475_v10  ;;  %v885_v48 = vmul.f32 %v2435_v37, %v773_v27  ;;  %v884_v43 = vmul.f32 %v2433_v53, %v772_v19 }
 0x40b   : > { %v1030_v51 = vpop.xlane.xlu0 %1029  ;;  %1087 = vst.msk [vmem:[#allocation3 + $0x8] sm:$0xff] %vm407_vm6, %v1054_v3  ;;  %2462 = vpow2.f32 %v1473_v54 }
 0x40c   : > { %v1057_v29 = vadd.f32 %v1030_v51, %v3799_v55  ;;  %v1028_v21 = vpop.xlane.xlu1 %1027  ;;  %v2439_v55 = vpop.eup %2438  ;;  %2464 = vpow2.f32 %v1539_v56 }
 0x40d   : > { %v1056_v4 = vadd.f32 %v1028_v21, %v880_v39  ;;  %v2441_v32 = vpop.eup %2440  ;;  %2466 = vpow2.f32 %v1537_v13 }
 0x40e   : > { %1090 = vst.msk [vmem:[#allocation3 + $0x20] sm:$0xff] %vm407_vm6, %v1057_v29  ;;  %v2443_v58 = vpop.eup %2442 }
 0x40f   : > { %1089 = vst.msk [vmem:[#allocation3 + $0x18] sm:$0xff] %vm407_vm6, %v1056_v4  ;;  %v1034_v47 = vpop.xlane.xlu0 %1033  ;;  %v2445_v61 = vpop.eup %2444 }
 0x410   : > { %v1059_v25 = vadd.f32 %v1034_v47, %v883_v57  ;;  %v1032_v50 = vpop.xlane.xlu1 %1031  ;;  %v2447_v29 = vpop.eup %2446 }
 0x411   : > { %v1058_v52 = vadd.f32 %v1032_v50, %v882_v6  ;;  %v1413_v3 = vld [vmem:[#allocation3 + $0x10] sm:$0xff]  ;;  %v2449_v54 = vpop.eup %2448 }
 0x412   : > { %1092 = vst.msk [vmem:[#allocation3 + $0x30] sm:$0xff] %vm407_vm6, %v1059_v25  ;;  %v1412_v5 = vld [vmem:[#allocation3 + $0x8] sm:$0xff]  ;;  %v1493_v51 = vmul.f32 %v2443_v58, %v1413_v3  ;;  %v2451_v47 = vpop.eup %2450 }
 0x413   : > { %1091 = vst.msk [vmem:[#allocation3 + $0x28] sm:$0xff] %vm407_vm6, %v1058_v52  ;;  %v1038_v62 = vpop.xlane.xlu0 %1037  ;;  %v1492_v39 = vmul.f32 %v2437_v11, %v1412_v5  ;;  %v2453_v11 = vpop.eup %2452 }
 0x414   : > { %v1061_v36 = vadd.f32 %v1038_v62, %v885_v48  ;;  %v1036_v10 = vpop.xlane.xlu1 %1035  ;;  %v1557_v4 = vadd.f32 %v2445_v61, %v1493_v51  ;;  %v2455_v25 = vpop.eup %2454  ;;  %v1680_v51 = vld [vmem:[#allocation15] sm:$0x1] }
 0x415   : > { %v1415_v21 = vld [vmem:[#allocation3 + $0x20] sm:$0xff]  ;;  %v1060_v9 = vadd.f32 %v1036_v10, %v884_v43  ;;  %v1556_v56 = vadd.f32 %v2439_v55, %v1492_v39  ;;  %v2457_v19 = vpop.eup %2456 }
 0x416   : > { %v1495_v37 = vmul.f32 %v2447_v29, %v1415_v21  ;;  %v1414_v57 = vld [vmem:[#allocation3 + $0x18] sm:$0xff]  ;;  %1094 = vst.msk [vmem:[#allocation3 + $0x40] sm:$0xff] %vm407_vm6, %v1061_v36  ;;  %1589 = vst.msk [vmem:[#allocation3 + $0x10] sm:$0xff] %vm407_vm6, %v1557_v4  ;;  %v840_v4 = vsub.f32 %v3510_v28, %v3513_v26  ;;  %v4061_v28 = vsub.f32 %v3542_v12, %v3551_v41 }
 0x417   : > { %v1494_v13 = vmul.f32 %v2441_v32, %v1414_v57  ;;  %1093 = vst.msk [vmem:[#allocation3 + $0x38] sm:$0xff] %vm407_vm6, %v1060_v9  ;;  %1588 = vst.msk [vmem:[#allocation3 + $0x8] sm:$0xff] %vm407_vm6, %v1556_v56  ;;  %v2459_v32 = vpop.eup %2458  ;;  %v4059_v56 = vsub.f32 %v3526_v38, %v3530_v8  ;;  %v1452_v38 = vsub.f32 %v3740_v30, %v3749_v0  ;;  %v4062_v8 = vld [vmem:[#allocation30_spill] sm:$0xff]  ;;  %v4065_v12 = vld [vmem:[#allocation32_spill] sm:$0xff] }
 0x418   : > { %v1559_v53 = vadd.f32 %v2449_v54, %v1495_v37  ;;  %v2461_v58 = vpop.eup %2460  ;;  %v869_v26 = vmul.f32 1.442695, %v4061_v28  ;;  %v4066_v41 = vld [vmem:[#allocation33_spill] sm:$0xff]  ;;  %v1453_v30 = vsub.f32 %v3780_v23, %v3786_v49  ;;  %v774_v23 = vld [vmem:[#allocation3 + $0x48] sm:$0xff] }
 0x419   : > { %v1558_v6 = vadd.f32 %v2451_v47, %v1494_v13  ;;  %v1417_v27 = vld [vmem:[#allocation3 + $0x30] sm:$0xff]  ;;  %v2463_v62 = vpop.eup %2462  ;;  %v863_v37 = vmul.f32 1.442695, %v4059_v56  ;;  %v867_v13 = vmul.f32 1.442695, %v840_v4  ;;  %v4060_v47 = vsub.f32 %v3532_v63, %v3540_v18 }
 0x41a   : > { %1591 = vst.msk [vmem:[#allocation3 + $0x20] sm:$0xff] %vm407_vm6, %v1559_v53  ;;  %v1497_v55 = vmul.f32 %v2453_v11, %v1417_v27  ;;  %v1416_v50 = vld [vmem:[#allocation3 + $0x28] sm:$0xff]  ;;  %v2465_v39 = vpop.eup %2464 }
 0x41b   : > { %1590 = vst.msk [vmem:[#allocation3 + $0x18] sm:$0xff] %vm407_vm6, %v1558_v6  ;;  %v1496_v52 = vmul.f32 %v2455_v25, %v1416_v50  ;;  %v2467_v10 = vpop.eup %2466  ;;  %2468 = vpow2.f32 %v863_v37  ;;  %v865_v53 = vmul.f32 1.442695, %v4060_v47  ;;  %v4063_v27 = vld [vmem:[#allocation31_spill] sm:$0xff]  ;;  %v1516_v25 = vsub.f32 %v3736_v33, %v3749_v0 }
 0x41c   : > { %v1561_v48 = vadd.f32 %v2457_v19, %v1497_v55  ;;  %2470 = vpow2.f32 %v867_v13  ;;  %v4064_v63 = vsub.f32 %v4062_v8, %v4063_v27  ;;  %v1477_v55 = vmul.f32 1.442695, %v1452_v38 }
 0x41d   : > { %v1560_v3 = vadd.f32 %v2459_v32, %v1496_v52  ;;  %v1419_v5 = vld [vmem:[#allocation3 + $0x40] sm:$0xff]  ;;  %2472 = vpow2.f32 %v865_v53  ;;  %v1454_v50 = vsub.f32 %v3767_v45, %v3778_v42  ;;  %v4067_v19 = vsub.f32 %v4065_v12, %v4066_v41 }
 0x41e   : > { %s2224_s7 = spop %2223  ;;  %1593 = vst.msk [vmem:[#allocation3 + $0x30] sm:$0xff] %vm407_vm6, %v1561_v48  ;;  %v1499_v43 = vmul.f32 %v2461_v58, %v1419_v5  ;;  %v1418_v61 = vld [vmem:[#allocation3 + $0x38] sm:$0xff]  ;;  %v871_v18 = vmul.f32 1.442695, %v4064_v63  ;;  %2474 = vpow2.f32 %v869_v26  ;;  %v1541_v58 = vmul.f32 1.442695, %v1516_v25 }
 0x41f   : > { %s1721_s17 = smul.f32 -0.125, %s2224_s7  ;;  %1592 = vst.msk [vmem:[#allocation3 + $0x28] sm:$0xff] %vm407_vm6, %v1560_v3  ;;  %v1498_v36 = vmul.f32 %v2463_v62, %v1418_v61  ;;  %v873_v52 = vmul.f32 1.442695, %v4067_v19  ;;  %v1518_v33 = vsub.f32 %v3761_v15, %v3778_v42  ;;  %v4068_v45 = vld [vmem:[#allocation34_spill] sm:$0xff]  ;;  %v4069_v5 = vld [vmem:[#allocation35_spill] sm:$0xff]  ;;  %v1517_v61 = vsub.f32 %v3770_v1, %v3786_v49 }
 0x420   : > { %v1563_v29 = vadd.f32 %v2465_v39, %v1499_v43  ;;  %2476 = vpow2.f32 %v871_v18  ;;  %v4070_v62 = vsub.f32 %v4068_v45, %v4069_v5  ;;  %v1479_v39 = vmul.f32 1.442695, %v1453_v30 }
 0x421   : > { %v1722_v21 = vstv %s1721_s17  ;;  %v1562_v9 = vadd.f32 %v2467_v10, %v1498_v36  ;;  %2478 = vpow2.f32 %v1477_v55  ;;  %v1455_v15 = vsub.f32 %v3814_v40, %v3820_v34 }
 0x422   : > { %v1723_v54 = vadd.f32 %v1722_v21, %v1680_v51  ;;  %1595 = vst.msk [vmem:[#allocation3 + $0x40] sm:$0xff] %vm407_vm6, %v1563_v29  ;;  %v875_v43 = vmul.f32 1.442695, %v4070_v62  ;;  %v1481_v51 = vmul.f32 1.442695, %v1454_v50  ;;  %2480 = vpow2.f32 %v873_v52 }
 0x423   : > { %1594 = vst.msk [vmem:[#allocation3 + $0x38] sm:$0xff] %vm407_vm6, %v1562_v9 }
 0x424   : > { %1725 = vst.msk [vmem:[#allocation15] sm:$0x1] %vm1724_vm8, %v1723_v54 }
 0x427   : > { %s2226_s6 = spop %2225 }
 0x428   : > { %s1866_s16 = smul.f32 0.0625, %s2226_s6  ;;  %s2228_s19 = spop %2227  ;;  %v2469_v3 = vpop.eup %2468 }
 0x429   : > { %s1892_s8 = smul.f32 0.0625, %s2228_s19 }
 0x42a   : > { %v1867_v11 = vstv %s1866_s16 }
 0x42b   : > { %v1825_v57 = vld [vmem:[#allocation15] sm:$0x1]  ;;  %v1893_v48 = vstv %s1892_s8 }
 0x42c   : > { %v1868_v6 = vadd.f32 %v1867_v11, %v1825_v57 }
 0x42e   : > { %1870 = vst.msk [vmem:[#allocation15] sm:$0x1] %vm1724_vm8, %v1868_v6 }
 0x435   : > { %v1880_v32 = vld [vmem:[#allocation15] sm:$0x1] }
 0x436   : > { %v1894_v0 = vadd.f32 %v1893_v48, %v1880_v32 }
 0x438   : > { %1896 = vst.msk [vmem:[#allocation15] sm:$0x1] %vm1724_vm8, %v1894_v0 }
 0x439   : > { %2635 = shalt.err (!%p2632_p3)
}
 0x43a   : > { %s4071_s23 = sld [smem:[#allocation38_spill]]  ;;  %2482 = vpow2.f32 %v1541_v58  ;;  %v1545_v1 = vmul.f32 1.442695, %v1518_v33  ;;  %v886_v42 = vmul.f32 %v2469_v3, %v774_v23  ;;  %v2471_v49 = vpop.eup %2470  ;;  %v1543_v40 = vmul.f32 1.442695, %v1517_v61  ;;  %v776_v29 = vld [vmem:[#allocation3 + $0x58] sm:$0xff] }
 0x43b   : > { %2484 = vpow2.f32 %v875_v43  ;;  %v1519_v36 = vsub.f32 %v3806_v44, %v3820_v34  ;;  %v2473_v21 = vpop.eup %2472  ;;  %v1456_v9 = vsub.f32 %v3803_v20, %v3812_v14  ;;  %v775_v4 = vld [vmem:[#allocation3 + $0x50] sm:$0xff]  ;;  %v1483_v56 = vmul.f32 1.442695, %v1455_v15  ;;  %v777_v20 = vld [vmem:[#allocation3 + $0x60] sm:$0xff]  ;;  %v778_v27 = vld [vmem:[#allocation3 + $0x68] sm:$0xff] }
 0x43c   : > { %2486 = vpow2.f32 %v1481_v51  ;;  %v888_v37 = vmul.f32 %v2471_v49, %v776_v29  ;;  %v887_v13 = vmul.f32 %v2473_v21, %v775_v4  ;;  %v2475_v44 = vpop.eup %2474  ;;  %v1457_v53 = vsub.f32 %v3842_v35, %v3848_v7  ;;  %v779_v19 = vld [vmem:[#allocation3 + $0x70] sm:$0xff]  ;;  %v780_v5 = vld [vmem:[#allocation3 + $0x78] sm:$0xff] }
 0x43d   : > { %2488 = vpow2.f32 %v1479_v39  ;;  %v1547_v57 = vmul.f32 1.442695, %v1519_v36  ;;  %v1485_v34 = vmul.f32 1.442695, %v1456_v9  ;;  %v1549_v26 = vmul.f32 1.442695, %v1520_v59  ;;  %v2477_v38 = vpop.eup %2476 }
 0x43e   : > { %v1040_v10 = vpop.xlane.xlu1 %1039  ;;  %2490 = vpow2.f32 %v1545_v1  ;;  %v889_v8 = vmul.f32 %v2475_v44, %v777_v20  ;;  %v1487_v63 = vmul.f32 1.442695, %v1457_v53  ;;  %v2479_v18 = vpop.eup %2478  ;;  %v1551_v16 = vmul.f32 1.442695, %v1521_v24 }
 0x43f   : > { %v1062_v54 = vadd.f32 %v1040_v10, %v886_v42  ;;  %2492 = vpow2.f32 %v1543_v40  ;;  %v2481_v50 = vpop.eup %2480  ;;  %v890_v59 = vmul.f32 %v2477_v38, %v778_v27  ;;  %v1489_v30 = vmul.f32 1.442695, %v1458_v17 }
 0x440   : > { %2238 = dma.vmem_to_hbm [thread:$0]  (%p2255_p13), %s1905_s1, 16, %s4071_s23, [#allocation9]   ;;  %2494 = vpow2.f32 %v1483_v56  ;;  %v1553_v60 = vmul.f32 1.442695, %v1522_v2  ;;  %v891_v3 = vmul.f32 %v2481_v50, %v779_v19 }
 0x441   : > { %1095 = vst.msk [vmem:[#allocation3 + $0x48] sm:$0xff] %vm407_vm6, %v1062_v54  ;;  %2496 = vpow2.f32 %v1547_v57 }
 0x442   : > { %v1044_v47 = vpop.xlane.xlu1 %1043  ;;  %2498 = vpow2.f32 %v1485_v34 }
 0x443   : > { %v1042_v11 = vpop.xlane.xlu0 %1041  ;;  %v1064_v6 = vadd.f32 %v1044_v47, %v888_v37  ;;  %2500 = vpow2.f32 %v1549_v26 }
 0x444   : > { %v1063_v28 = vadd.f32 %v1042_v11, %v887_v13  ;;  %2502 = vpow2.f32 %v1487_v63 }
 0x445   : > { %1097 = vst.msk [vmem:[#allocation3 + $0x58] sm:$0xff] %vm407_vm6, %v1064_v6  ;;  %2504 = vpow2.f32 %v1551_v16 }
 0x446   : > { %1096 = vst.msk [vmem:[#allocation3 + $0x50] sm:$0xff] %vm407_vm6, %v1063_v28  ;;  %2506 = vpow2.f32 %v1489_v30 }
 0x447   : > { %v1046_v35 = vpop.xlane.xlu0 %1045  ;;  %v2483_v12 = vpop.eup %2482  ;;  %2508 = vpow2.f32 %v1553_v60 }
 0x448   : > { %v1420_v25 = vld [vmem:[#allocation3 + $0x48] sm:$0xff]  ;;  %v1065_v55 = vadd.f32 %v1046_v35, %v889_v8  ;;  %v2485_v52 = vpop.eup %2484 }
 0x449   : > { %v1500_v14 = vmul.f32 %v2479_v18, %v1420_v25  ;;  %v2487_v58 = vpop.eup %2486  ;;  %v892_v22 = vmul.f32 %v2485_v52, %v780_v5 }
 0x44a   : > { %1098 = vst.msk [vmem:[#allocation3 + $0x60] sm:$0xff] %vm407_vm6, %v1065_v55  ;;  %v1048_v41 = vpop.xlane.xlu1 %1047  ;;  %v2489_v0 = vpop.eup %2488 }
 0x44b   : > { %v1564_v32 = vadd.f32 %v2483_v12, %v1500_v14  ;;  %v1066_v48 = vadd.f32 %v1048_v41, %v890_v59  ;;  %v2491_v46 = vpop.eup %2490 }
 0x44c   : > { %v1422_v33 = vld [vmem:[#allocation3 + $0x58] sm:$0xff]  ;;  %v2493_v62 = vpop.eup %2492 }
 0x44d   : > { %1596 = vst.msk [vmem:[#allocation3 + $0x48] sm:$0xff] %vm407_vm6, %v1564_v32  ;;  %v1421_v7 = vld [vmem:[#allocation3 + $0x50] sm:$0xff]  ;;  %v1502_v24 = vmul.f32 %v2487_v58, %v1422_v33  ;;  %1099 = vst.msk [vmem:[#allocation3 + $0x68] sm:$0xff] %vm407_vm6, %v1066_v48  ;;  %v2495_v51 = vpop.eup %2494 }
 0x44e   : > { %v1501_v17 = vmul.f32 %v2489_v0, %v1421_v7  ;;  %v1050_v45 = vpop.xlane.xlu0 %1049  ;;  %v2497_v15 = vpop.eup %2496 }
 0x44f   : > { %v1566_v43 = vadd.f32 %v2491_v46, %v1502_v24  ;;  %v1067_v61 = vadd.f32 %v1050_v45, %v891_v3  ;;  %v2499_v42 = vpop.eup %2498 }
 0x450   : > { %v1565_v23 = vadd.f32 %v2493_v62, %v1501_v17  ;;  %v2501_v10 = vpop.eup %2500 }
 0x451   : > { %1598 = vst.msk [vmem:[#allocation3 + $0x58] sm:$0xff] %vm407_vm6, %v1566_v43  ;;  %v1423_v31 = vld [vmem:[#allocation3 + $0x60] sm:$0xff]  ;;  %1100 = vst.msk [vmem:[#allocation3 + $0x70] sm:$0xff] %vm407_vm6, %v1067_v61  ;;  %v2503_v21 = vpop.eup %2502 }
 0x452   : > { %1597 = vst.msk [vmem:[#allocation3 + $0x50] sm:$0xff] %vm407_vm6, %v1565_v23  ;;  %v1503_v2 = vmul.f32 %v2495_v51, %v1423_v31  ;;  %v1052_v39 = vpop.xlane.xlu1 %1051  ;;  %v2505_v4 = vpop.eup %2504 }
 0x453   : > { %v1068_v1 = vadd.f32 %v1052_v39, %v892_v22  ;;  %v2507_v37 = vpop.eup %2506 }
 0x454   : > { %v1567_v49 = vadd.f32 %v2497_v15, %v1503_v2  ;;  %v1424_v40 = vld [vmem:[#allocation3 + $0x68] sm:$0xff]  ;;  %v2509_v47 = vpop.eup %2508 }
 0x455   : > { %v1504_v36 = vmul.f32 %v2499_v42, %v1424_v40  ;;  %1101 = vst.msk [vmem:[#allocation3 + $0x78] sm:$0xff] %vm407_vm6, %v1068_v1 }
 0x456   : > { %1599 = vst.msk [vmem:[#allocation3 + $0x60] sm:$0xff] %vm407_vm6, %v1567_v49 }
 0x457   : > { %v1568_v29 = vadd.f32 %v2501_v10, %v1504_v36 }
 0x458   : > { %v1425_v9 = vld [vmem:[#allocation3 + $0x70] sm:$0xff] }
 0x459   : > { %1600 = vst.msk [vmem:[#allocation3 + $0x68] sm:$0xff] %vm407_vm6, %v1568_v29  ;;  %v1505_v54 = vmul.f32 %v2503_v21, %v1425_v9 }
 0x45b   : > { %v1569_v56 = vadd.f32 %v2505_v4, %v1505_v54 }
 0x45c   : > { %v1426_v57 = vld [vmem:[#allocation3 + $0x78] sm:$0xff] }
 0x45d   : > { %1601 = vst.msk [vmem:[#allocation3 + $0x70] sm:$0xff] %vm407_vm6, %v1569_v56  ;;  %v1506_v13 = vmul.f32 %v2507_v37, %v1426_v57 }
 0x45f   : > { %v1570_v44 = vadd.f32 %v2509_v47, %v1506_v13 }
 0x461   : > { %1602 = vst.msk [vmem:[#allocation3 + $0x78] sm:$0xff] %vm407_vm6, %v1570_v44 }
 0x462   : > { %2699 = dma.done.wait (%p2255_p13), [#allocation9], 16  }
 0x463   : > { %2701 = vsyncadd (%p2255_p13), [#allocation9], 4294967280 }
 0x464 PF: > { %s26_s27 = sadd.s32 1, %s2736_s27   ;;  %s4072_s13 = sld [smem:[#allocation21_spill]] }
 0x465   : > { %p23_p9 = scmp.ge.s32.totalorder %s26_s27, 4   ;;  %s4073_s20 = smov %s2708_s21 }
 0x466   : > { %s4074_s21 = smov %s2712_s22  ;;  %s4075_s22 = smov %s2920_s15 }
 0x467   : > { %s4076_s23 = smov %s2720_s24  ;;  %s4077_s24 = smov %s2724_s25 }
 0x468   : > { %s4079_s0 = smov %s2732_s26  ;;  %s4080_s26 = smov %s4082_s29 }
 0x469   :  { %25 = sbr.rel (!%p23_p9) target bundleno = 16 (0x10), region = 143 }
 0x46a   : > { %s4078_s25 = smov %s4072_s13 }
 0x46e   :  { %1917 = vsyncpa [#allocation8], 1 }
 0x46f   :  { %1919 = vsyncpa [#allocation8 + $0x1], 1 }
 0x470   :  { %1920 = vsyncpa [#allocation11], 1 }
 0x471   :  { %1922 = vsyncpa [#allocation11 + $0x1], 1 }
 0x472   :  { %1923 = vsyncpa [#allocation14], 1 }
 0x473   :  { %1925 = vsyncpa [#allocation14 + $0x1], 1 }
 0x474   :  { %1926 = vsyncpa [#allocation9], 1 }
 0x475   :  { %1928 = vsyncpa [#allocation9 + $0x1], 1 }

</bundles_post_ra>
